<compile_context>
chip_gen: v6e
topology: v6e:2x2x1
jax: 0.10.0
libtpu: 0.0.40
codegen_flags: <defaults>
</compile_context>

<pallas_src>
import functools

import jax
import jax.numpy as jnp
from jax.experimental import pallas as pl
from jax.experimental.pallas import tpu as pltpu

NUM_CLASSES = 5
IN_FEATURES = 768
HIDDEN = (512, 256, 128)
PAD_CLASSES = 128  # pad final output dim to a lane-dense 128, slice to 5 after
BN_EPS = 1e-5


def _round_up(x, m):
    return (x + m - 1) // m * m


def _classifier_kernel(x_ref,
                       w1_ref, t1_ref,
                       w2_ref, t2_ref,
                       w3_ref, t3_ref,
                       w4_ref, b4_ref,
                       o_ref,
                       acc_ref,
                       *, inv_t, t_rem):
    t = pl.program_id(1)
    nt = pl.num_programs(1)

    @pl.when(t == 0)
    def _():
        acc_ref[...] = jnp.zeros_like(acc_ref)

    # Partial time-sum for this T tile (mean-pool accumulator, f32).
    # dtype=f32 lets the widening fuse into the reduction; no wrapper-side
    # pad/astype passes over x exist any more.
    if t_rem == 0:
        acc_ref[...] += jnp.sum(x_ref[...], axis=1, dtype=jnp.float32)
    else:
        # T does not divide tt: only the first t_rem time rows of the last
        # tile are valid.  t_rem is static, so a static slice (no iota/where
        # masking) handles it; the common path is untouched.
        @pl.when(t < nt - 1)
        def _():
            acc_ref[...] += jnp.sum(x_ref[...], axis=1, dtype=jnp.float32)

        @pl.when(t == nt - 1)
        def _():
            acc_ref[...] += jnp.sum(x_ref[:, :t_rem, :], axis=1,
                                    dtype=jnp.float32)

    @pl.when(t == nt - 1)
    def _():
        # Finish the mean, then run the MLP head.  Only MXU operands are cast
        # to bf16; all elementwise math (shift + ReLU) stays f32.
        emb = (acc_ref[...] * inv_t).astype(jnp.bfloat16)              # (TB, 768)

        h = jnp.dot(emb, w1_ref[...], preferred_element_type=jnp.float32)
        h = jnp.maximum(h + t1_ref[...], 0.0)                          # (TB, 512)

        h = jnp.dot(h.astype(jnp.bfloat16), w2_ref[...],
                    preferred_element_type=jnp.float32)
        h = jnp.maximum(h + t2_ref[...], 0.0)                          # (TB, 256)

        h = jnp.dot(h.astype(jnp.bfloat16), w3_ref[...],
                    preferred_element_type=jnp.float32)
        h = jnp.maximum(h + t3_ref[...], 0.0)                          # (TB, 128)

        out = jnp.dot(h.astype(jnp.bfloat16), w4_ref[...],
                      preferred_element_type=jnp.float32) + b4_ref[...]
        o_ref[...] = out.astype(o_ref.dtype)                           # (TB, 128)


def _device_kind():
    try:
        return jax.devices()[0].device_kind.lower()
    except Exception:
        return ""


def _select_tiling(B, T, itemsize):
    """Chip-aware (tb, nb, tt, nt, vmem_limit_bytes) selection."""
    kind = _device_kind()
    if "v7" in kind:
        # v7x: 2 TensorCores, 64 MiB VMEM per TC -> keep x double-buffers small
        # and make sure the parallel batch axis has >= 2 tiles.
        x_budget, vmem_limit, dual_core = 26 << 20, 48 << 20, True
    elif "v5" in kind or "v6" in kind:
        # v5e/v6e: 1 TC, 128 MiB VMEM -> big time tiles, raise the scoped cap.
        x_budget, vmem_limit, dual_core = 52 << 20, 64 << 20, False
    else:
        # Unknown chip: stay well inside the default scoped VMEM limit.
        x_budget, vmem_limit, dual_core = 12 << 20, None, False

    # Batch tile: lane/MXU friendly 128; on a dual-core chip split so both
    # TensorCores get a batch tile.
    tb = 128
    if dual_core and B > 16:
        tb = min(tb, _round_up(pl.cdiv(B, 2), 16))
    if B <= tb:
        tb = B
    nb = pl.cdiv(B, tb)

    # Time tile: as large as the x double-buffer budget allows (multiple of 16
    # for bf16 sublane packing); full T when T is small.
    tt_cap = x_budget // (2 * tb * IN_FEATURES * itemsize)
    tt = max(16, (min(128, int(tt_cap)) // 16) * 16)
    if T <= tt:
        tt = T
    nt = pl.cdiv(T, tt)

    return tb, nb, tt, nt, vmem_limit


def finetune_classifier_forward(x, params):
    """x: [B, T, 768] backbone embeddings (f32 or bf16). Returns logits [B, NUM_CLASSES]."""
    B, T, F = x.shape
    assert F == IN_FEATURES

    # No wrapper-side pad / dtype-cast passes over x (they would each re-read
    # and re-write the whole HBM-resident array); the kernel handles the
    # ragged last time tile and reads x in its native dtype.
    tb, nb, tt, nt, vmem_limit = _select_tiling(B, T, x.dtype.itemsize)
    t_rem = T % tt  # 0 when tt divides T (incl. the nt == 1 / tt == T case)

    weights = (params["w1"], params["t1"],
               params["w2"], params["t2"],
               params["w3"], params["t3"],
               params["w4"], params["b4"])

    def _const_spec(a):
        nd = a.ndim
        return pl.BlockSpec(a.shape, lambda b, t, _nd=nd: (0,) * _nd)

    flops = int(2 * B * (768 * 512 + 512 * 256 + 256 * 128 + 128 * PAD_CLASSES)
                + B * T * IN_FEATURES)
    bytes_accessed = int(x.size * x.dtype.itemsize
                         + sum(a.size * a.dtype.itemsize for a in weights)
                         + B * PAD_CLASSES * 4)

    kernel = functools.partial(_classifier_kernel,
                               inv_t=1.0 / float(T), t_rem=t_rem)

    compiler_kwargs = dict(dimension_semantics=("parallel", "arbitrary"))
    if vmem_limit is not None:
        compiler_kwargs["vmem_limit_bytes"] = int(vmem_limit)

    out_padded = pl.pallas_call(
        kernel,
        out_shape=jax.ShapeDtypeStruct((B, PAD_CLASSES), jnp.float32),
        grid_spec=pltpu.PrefetchScalarGridSpec(
            num_scalar_prefetch=0,
            grid=(nb, nt),
            in_specs=[pl.BlockSpec((tb, tt, IN_FEATURES), lambda b, t: (b, t, 0))]
                     + [_const_spec(a) for a in weights],
            out_specs=pl.BlockSpec((tb, PAD_CLASSES), lambda b, t: (b, 0)),
            scratch_shapes=[pltpu.VMEM((tb, IN_FEATURES), jnp.float32)],
        ),
        compiler_params=pltpu.CompilerParams(**compiler_kwargs),
        cost_estimate=pl.CostEstimate(
            flops=flops, transcendentals=0, bytes_accessed=bytes_accessed),
    )(x, *weights)

    return out_padded[:, :NUM_CLASSES]


def init_params(key):
    """Deterministic synthetic parameters matching the PyTorch module shapes.

    Linear weights are stored transposed ([in, out]) relative to PyTorch, in
    bfloat16, with the eval-mode BatchNorm1d scale folded into the weight
    columns (same layer, pre-ReLU):
        scale = gamma / sqrt(running_var + eps)
        w_folded = w * scale                (per output column)
        shift    = (bias - running_mean) * scale + beta
    """
    dims = (IN_FEATURES,) + HIDDEN  # 768 -> 512 -> 256 -> 128
    keys = jax.random.split(key, 20)
    ki = iter(keys)
    params = {}

    for li in range(3):
        d_in, d_out = dims[li], dims[li + 1]
        w = jax.random.normal(next(ki), (d_in, d_out), jnp.float32) * 0.02
        b = jax.random.normal(next(ki), (d_out,), jnp.float32) * 0.01
        gamma = 1.0 + 0.1 * jax.random.normal(next(ki), (d_out,), jnp.float32)
        beta = 0.01 * jax.random.normal(next(ki), (d_out,), jnp.float32)
        run_mean = 0.05 * jax.random.normal(next(ki), (d_out,), jnp.float32)
        run_var = 1.0 + 0.1 * jnp.abs(
            jax.random.normal(next(ki), (d_out,), jnp.float32))
        scale = gamma / jnp.sqrt(run_var + BN_EPS)
        shift = (b - run_mean) * scale + beta
        params[f"w{li + 1}"] = (w * scale[None, :]).astype(jnp.bfloat16)
        params[f"t{li + 1}"] = shift.reshape(1, d_out).astype(jnp.float32)

    # Final Linear(128, NUM_CLASSES), zero-padded to 128 output columns.
    w4 = jax.random.normal(next(ki), (HIDDEN[-1], NUM_CLASSES), jnp.float32) * 0.02
    b4 = jax.random.normal(next(ki), (NUM_CLASSES,), jnp.float32) * 0.01
    w4_pad = jnp.zeros((HIDDEN[-1], PAD_CLASSES), jnp.float32).at[:, :NUM_CLASSES].set(w4)
    b4_pad = jnp.zeros((1, PAD_CLASSES), jnp.float32).at[0, :NUM_CLASSES].set(b4)
    params["w4"] = w4_pad.astype(jnp.bfloat16)
    params["b4"] = b4_pad
    return params


def _reference_forward(x, params):
    """Plain-JAX reference with matching numerics (bf16 MXU operands, f32 acc)."""
    emb = jnp.mean(x.astype(jnp.float32), axis=1)
    h = emb
    for li in range(3):
        h = jnp.dot(h.astype(jnp.bfloat16), params[f"w{li + 1}"],
                    preferred_element_type=jnp.float32)
        h = jnp.maximum(h + params[f"t{li + 1}"], 0.0)
    out = jnp.dot(h.astype(jnp.bfloat16), params["w4"],
                  preferred_element_type=jnp.float32) + params["b4"]
    return out[:, :NUM_CLASSES]


if __name__ == "__main__":
    key = jax.random.PRNGKey(0)
    k_x, k_p = jax.random.split(key)

    B, T = 8, 8  # small batch of backbone embedding sequences
    # Constructed directly in the storage dtype — the forward wrapper performs
    # no extra HBM passes (no pad, no astype).
    x = jax.random.normal(k_x, (B, T, IN_FEATURES), jnp.float32).astype(jnp.bfloat16)
    params = init_params(k_p)

    logits = finetune_classifier_forward(x, params)
    logits = jax.block_until_ready(logits)

    ref = _reference_forward(x, params)
    assert logits.shape == (B, NUM_CLASSES)
    assert jnp.allclose(logits, ref, atol=2e-2, rtol=2e-2), "mismatch vs reference"

    print("KERNEL_OK")
</pallas_src>

<mosaic_0001>
module attributes {stable_mosaic.version = 11 : i64} {
  func.func @_classifier_kernel(%arg0: i32, %arg1: i32, %arg2: memref<8x8x768xbf16, #tpu.memory_space<vmem>>, %arg3: memref<768x512xbf16, #tpu.memory_space<vmem>>, %arg4: memref<1x512xf32, #tpu.memory_space<vmem>>, %arg5: memref<512x256xbf16, #tpu.memory_space<vmem>>, %arg6: memref<1x256xf32, #tpu.memory_space<vmem>>, %arg7: memref<256x128xbf16, #tpu.memory_space<vmem>>, %arg8: memref<1x128xf32, #tpu.memory_space<vmem>>, %arg9: memref<128x128xbf16, #tpu.memory_space<vmem>>, %arg10: memref<1x128xf32, #tpu.memory_space<vmem>>, %arg11: memref<8x128xf32, #tpu.memory_space<vmem>>, %arg12: memref<8x768xf32, #tpu.memory_space<vmem>>) attributes {dimension_semantics = [#tpu.dimension_semantics<parallel>, #tpu.dimension_semantics<arbitrary>], iteration_bounds = array<i64: 1, 1>, scalar_prefetch = 0 : i64, scratch_operands = 1 : i64, tpu.core_type = #tpu.core_type<tc>, window_params = [{transform_indices = @transform_0, window_bounds = array<i64: 8, 8, 768>}, {pipeline_mode = #tpu.pipeline_mode<synchronous>, transform_indices = @transform_1, window_bounds = array<i64: 768, 512>}, {pipeline_mode = #tpu.pipeline_mode<synchronous>, transform_indices = @transform_2, window_bounds = array<i64: 1, 512>}, {pipeline_mode = #tpu.pipeline_mode<synchronous>, transform_indices = @transform_3, window_bounds = array<i64: 512, 256>}, {pipeline_mode = #tpu.pipeline_mode<synchronous>, transform_indices = @transform_4, window_bounds = array<i64: 1, 256>}, {pipeline_mode = #tpu.pipeline_mode<synchronous>, transform_indices = @transform_5, window_bounds = array<i64: 256, 128>}, {pipeline_mode = #tpu.pipeline_mode<synchronous>, transform_indices = @transform_6, window_bounds = array<i64: 1, 128>}, {pipeline_mode = #tpu.pipeline_mode<synchronous>, transform_indices = @transform_7, window_bounds = array<i64: 128, 128>}, {pipeline_mode = #tpu.pipeline_mode<synchronous>, transform_indices = @transform_8, window_bounds = array<i64: 1, 128>}, {transform_indices = @transform_9, window_bounds = array<i64: 8, 128>}]} {
    %c0_i32 = arith.constant 0 : i32
    %0 = arith.cmpi eq, %arg1, %c0_i32 : i32
    %1 = arith.extui %0 : i1 to i32
    %c0_i32_0 = arith.constant 0 : i32
    %2 = arith.cmpi ne, %1, %c0_i32_0 : i32
    scf.if %2 {
      %cst_9 = arith.constant 0.000000e+00 : f32
      %12 = vector.broadcast %cst_9 : f32 to vector<8x768xf32>
      %c0_10 = arith.constant 0 : index
      %c0_11 = arith.constant 0 : index
      %13 = vector.load %arg12[%c0_10, %c0_11] : memref<8x768xf32, #tpu.memory_space<vmem>>, vector<8x768xf32>
      tpu.vector_store %arg12[%c0_10, %c0_11], %12 {strides = array<i32>} : memref<8x768xf32, #tpu.memory_space<vmem>>, vector<8x768xf32>,
    } else {
    }
    %c0 = arith.constant 0 : index
    %c0_1 = arith.constant 0 : index
    %3 = vector.load %arg12[%c0, %c0_1] : memref<8x768xf32, #tpu.memory_space<vmem>>, vector<8x768xf32>
    %c0_2 = arith.constant 0 : index
    %c0_3 = arith.constant 0 : index
    %c0_4 = arith.constant 0 : index
    %4 = vector.load %arg2[%c0_2, %c0_3, %c0_4] : memref<8x8x768xbf16, #tpu.memory_space<vmem>>, vector<8x8x768xbf16>
    %5 = arith.extf %4 : vector<8x8x768xbf16> to vector<8x8x768xf32>
    %cst = arith.constant dense<0.000000e+00> : vector<8x768xf32>
    %6 = vector.multi_reduction <add>, %5, %cst [1] : vector<8x8x768xf32> to vector<8x768xf32>
    %7 = arith.addf %3, %6 : vector<8x768xf32>
    %c0_5 = arith.constant 0 : index
    %c0_6 = arith.constant 0 : index
    %8 = vector.load %arg12[%c0_5, %c0_6] : memref<8x768xf32, #tpu.memory_space<vmem>>, vector<8x768xf32>
    tpu.vector_store %arg12[%c0_5, %c0_6], %7 {strides = array<i32>} : memref<8x768xf32, #tpu.memory_space<vmem>>, vector<8x768xf32>,
    %c0_i32_7 = arith.constant 0 : i32
    %9 = arith.cmpi eq, %arg1, %c0_i32_7 : i32
    %10 = arith.extui %9 : i1 to i32
    %c0_i32_8 = arith.constant 0 : i32
    %11 = arith.cmpi ne, %10, %c0_i32_8 : i32
    scf.if %11 {
      %c0_9 = arith.constant 0 : index
      %c0_10 = arith.constant 0 : index
      %12 = vector.load %arg12[%c0_9, %c0_10] : memref<8x768xf32, #tpu.memory_space<vmem>>, vector<8x768xf32>
      %cst_11 = arith.constant 1.250000e-01 : f32
      %13 = vector.broadcast %cst_11 : f32 to vector<8x768xf32>
      %14 = arith.mulf %12, %13 : vector<8x768xf32>
      %15 = arith.truncf %14 : vector<8x768xf32> to vector<8x768xbf16>
      %c0_12 = arith.constant 0 : index
      %c0_13 = arith.constant 0 : index
      %16 = vector.load %arg3[%c0_12, %c0_13] : memref<768x512xbf16, #tpu.memory_space<vmem>>, vector<768x512xbf16>
      %cst_14 = arith.constant dense<0.000000e+00> : vector<8x512xf32>
      %17 = tpu.matmul %15, %16, %cst_14 {dimension_numbers = #tpu.dot_dimension_numbers<[1], [0], [0], [1], [0, 0, 1, 1], [], []>} : vector<8x768xbf16>, vector<768x512xbf16>, vector<8x512xf32> -> vector<8x512xf32>
      %c0_15 = arith.constant 0 : index
      %c0_16 = arith.constant 0 : index
      %18 = vector.load %arg4[%c0_15, %c0_16] : memref<1x512xf32, #tpu.memory_space<vmem>>, vector<1x512xf32>
      %19 = vector.broadcast %18 : vector<1x512xf32> to vector<8x512xf32>
      %20 = arith.addf %17, %19 : vector<8x512xf32>
      %cst_17 = arith.constant 0.000000e+00 : f32
      %21 = vector.broadcast %cst_17 : f32 to vector<8x512xf32>
      %22 = arith.maximumf %20, %21 : vector<8x512xf32>
      %23 = arith.truncf %22 : vector<8x512xf32> to vector<8x512xbf16>
      %c0_18 = arith.constant 0 : index
      %c0_19 = arith.constant 0 : index
      %24 = vector.load %arg5[%c0_18, %c0_19] : memref<512x256xbf16, #tpu.memory_space<vmem>>, vector<512x256xbf16>
      %cst_20 = arith.constant dense<0.000000e+00> : vector<8x256xf32>
      %25 = tpu.matmul %23, %24, %cst_20 {dimension_numbers = #tpu.dot_dimension_numbers<[1], [0], [0], [1], [0, 0, 1, 1], [], []>} : vector<8x512xbf16>, vector<512x256xbf16>, vector<8x256xf32> -> vector<8x256xf32>
      %c0_21 = arith.constant 0 : index
      %c0_22 = arith.constant 0 : index
      %26 = vector.load %arg6[%c0_21, %c0_22] : memref<1x256xf32, #tpu.memory_space<vmem>>, vector<1x256xf32>
      %27 = vector.broadcast %26 : vector<1x256xf32> to vector<8x256xf32>
      %28 = arith.addf %25, %27 : vector<8x256xf32>
      %cst_23 = arith.constant 0.000000e+00 : f32
      %29 = vector.broadcast %cst_23 : f32 to vector<8x256xf32>
      %30 = arith.maximumf %28, %29 : vector<8x256xf32>
      %31 = arith.truncf %30 : vector<8x256xf32> to vector<8x256xbf16>
      %c0_24 = arith.constant 0 : index
      %c0_25 = arith.constant 0 : index
      %32 = vector.load %arg7[%c0_24, %c0_25] : memref<256x128xbf16, #tpu.memory_space<vmem>>, vector<256x128xbf16>
      %cst_26 = arith.constant dense<0.000000e+00> : vector<8x128xf32>
      %33 = tpu.matmul %31, %32, %cst_26 {dimension_numbers = #tpu.dot_dimension_numbers<[1], [0], [0], [1], [0, 0, 1, 1], [], []>} : vector<8x256xbf16>, vector<256x128xbf16>, vector<8x128xf32> -> vector<8x128xf32>
      %c0_27 = arith.constant 0 : index
      %c0_28 = arith.constant 0 : index
      %34 = vector.load %arg8[%c0_27, %c0_28] : memref<1x128xf32, #tpu.memory_space<vmem>>, vector<1x128xf32>
      %35 = vector.broadcast %34 : vector<1x128xf32> to vector<8x128xf32>
      %36 = arith.addf %33, %35 : vector<8x128xf32>
      %cst_29 = arith.constant 0.000000e+00 : f32
      %37 = vector.broadcast %cst_29 : f32 to vector<8x128xf32>
      %38 = arith.maximumf %36, %37 : vector<8x128xf32>
      %39 = arith.truncf %38 : vector<8x128xf32> to vector<8x128xbf16>
      %c0_30 = arith.constant 0 : index
      %c0_31 = arith.constant 0 : index
      %40 = vector.load %arg9[%c0_30, %c0_31] : memref<128x128xbf16, #tpu.memory_space<vmem>>, vector<128x128xbf16>
      %cst_32 = arith.constant dense<0.000000e+00> : vector<8x128xf32>
      %41 = tpu.matmul %39, %40, %cst_32 {dimension_numbers = #tpu.dot_dimension_numbers<[1], [0], [0], [1], [0, 0, 1, 1], [], []>} : vector<8x128xbf16>, vector<128x128xbf16>, vector<8x128xf32> -> vector<8x128xf32>
      %c0_33 = arith.constant 0 : index
      %c0_34 = arith.constant 0 : index
      %42 = vector.load %arg10[%c0_33, %c0_34] : memref<1x128xf32, #tpu.memory_space<vmem>>, vector<1x128xf32>
      %43 = vector.broadcast %42 : vector<1x128xf32> to vector<8x128xf32>
      %44 = arith.addf %41, %43 : vector<8x128xf32>
      %c0_35 = arith.constant 0 : index
      %c0_36 = arith.constant 0 : index
      %45 = vector.load %arg11[%c0_35, %c0_36] : memref<8x128xf32, #tpu.memory_space<vmem>>, vector<8x128xf32>
      tpu.vector_store %arg11[%c0_35, %c0_36], %44 {strides = array<i32>} : memref<8x128xf32, #tpu.memory_space<vmem>>, vector<8x128xf32>,
    } else {
    }
    return
  }
  func.func @transform_0(%arg0: i32, %arg1: i32) -> (i32, i32, i32) {
    %c0_i32 = arith.constant 0 : i32
    %c0_i32_0 = arith.constant 0 : i32
    return %arg0, %arg1, %c0_i32 : i32, i32, i32
  }
  func.func @transform_1(%arg0: i32, %arg1: i32) -> (i32, i32) {
    %c0_i32 = arith.constant 0 : i32
    %c0_i32_0 = arith.constant 0 : i32
    %c0_i32_1 = arith.constant 0 : i32
    return %c0_i32, %c0_i32_0 : i32, i32
  }
  func.func @transform_2(%arg0: i32, %arg1: i32) -> (i32, i32) {
    %c0_i32 = arith.constant 0 : i32
    %c0_i32_0 = arith.constant 0 : i32
    %c0_i32_1 = arith.constant 0 : i32
    return %c0_i32, %c0_i32_0 : i32, i32
  }
  func.func @transform_3(%arg0: i32, %arg1: i32) -> (i32, i32) {
    %c0_i32 = arith.constant 0 : i32
    %c0_i32_0 = arith.constant 0 : i32
    %c0_i32_1 = arith.constant 0 : i32
    return %c0_i32, %c0_i32_0 : i32, i32
  }
  func.func @transform_4(%arg0: i32, %arg1: i32) -> (i32, i32) {
    %c0_i32 = arith.constant 0 : i32
    %c0_i32_0 = arith.constant 0 : i32
    %c0_i32_1 = arith.constant 0 : i32
    return %c0_i32, %c0_i32_0 : i32, i32
  }
  func.func @transform_5(%arg0: i32, %arg1: i32) -> (i32, i32) {
    %c0_i32 = arith.constant 0 : i32
    %c0_i32_0 = arith.constant 0 : i32
    %c0_i32_1 = arith.constant 0 : i32
    return %c0_i32, %c0_i32_0 : i32, i32
  }
  func.func @transform_6(%arg0: i32, %arg1: i32) -> (i32, i32) {
    %c0_i32 = arith.constant 0 : i32
    %c0_i32_0 = arith.constant 0 : i32
    %c0_i32_1 = arith.constant 0 : i32
    return %c0_i32, %c0_i32_0 : i32, i32
  }
  func.func @transform_7(%arg0: i32, %arg1: i32) -> (i32, i32) {
    %c0_i32 = arith.constant 0 : i32
    %c0_i32_0 = arith.constant 0 : i32
    %c0_i32_1 = arith.constant 0 : i32
    return %c0_i32, %c0_i32_0 : i32, i32
  }
  func.func @transform_8(%arg0: i32, %arg1: i32) -> (i32, i32) {
    %c0_i32 = arith.constant 0 : i32
    %c0_i32_0 = arith.constant 0 : i32
    %c0_i32_1 = arith.constant 0 : i32
    return %c0_i32, %c0_i32_0 : i32, i32
  }
  func.func @transform_9(%arg0: i32, %arg1: i32) -> (i32, i32) {
    %c0_i32 = arith.constant 0 : i32
    %c0_i32_0 = arith.constant 0 : i32
    return %arg0, %c0_i32 : i32, i32
  }
}

</mosaic_0001>

<bundles_post_ra>
// kernel: tpu_custom_call.1
= control target key start
LH: loop header
LB: loop body
LE: loop exit
PB: predicated region body
PF: predicated region fallthrough
CT: control target
= control target key end

     0   :  { %14 = vsyncpa [#allocation4], 0  ;;  %s4116_s0 = inlined_call_operand.hbm [shape: bf16[8,8,768], index: 0, kind: input, shape index: {}]   ;;  %s4117_s1 = inlined_call_operand.hbm [shape: bf16[768,512], index: 1, kind: input, shape index: {}]   ;;  %s4118_s2 = inlined_call_operand.hbm [shape: f32[1,512], index: 2, kind: input, shape index: {}]   ;;  %s4119_s3 = inlined_call_operand.hbm [shape: bf16[512,256], index: 3, kind: input, shape index: {}]   ;;  %s4120_s4 = inlined_call_operand.vmem [shape: f32[1,256], index: 4, kind: input, shape index: {}]   ;;  %s4121_s5 = inlined_call_operand.hbm [shape: bf16[256,128], index: 5, kind: input, shape index: {}]   ;;  %s4122_s6 = inlined_call_operand.vmem [shape: f32[1,128], index: 6, kind: input, shape index: {}]   ;;  %s4123_s7 = inlined_call_operand.hbm [shape: bf16[128,128], index: 7, kind: input, shape index: {}]   ;;  %s4124_s8 = inlined_call_operand.vmem [shape: f32[1,128], index: 8, kind: input, shape index: {}]   ;;  %s4125_s9 = inlined_call_operand.hbm [shape: f32[8,128], index: 9, kind: output, shape index: {}]  }
   0x1   :  { %15 = vsyncpa [#allocation7], 0 }
   0x2   :  { %16 = vsyncpa [#allocation10], 0 }
   0x3   :  { %17 = vsyncpa [#allocation13], 0 }
   0x4   :  { %18 = vsyncpa [#allocation5], 0  ;;  %s3751_s30 = smov [#allocation6]  }
   0x5   :  { %s36_s10 = sshll.u32 %s3751_s30, 4  ;;  %s37_s10 = int_to_ptr.vmem [resolvable:$true] %s36_s10 }
   0x6   :  { %s3609_s11 = scalar_lea.vmem %s37_s10, 24576  ;;  %p3614_p1 = scmp.lt.s32.totalorder %s37_s10, %s37_s10 }
   0x7   :  { %p3610_p0 = scmp.ne.s32.totalorder %s37_s10, %s3609_s11  ;;  %p3615_p2 = scmp.lt.s32.totalorder %s3609_s11, %s3609_s11 }
   0x9   :  { %p3616_p3 = por %p3615_p2, %p3614_p1 }
   0xb   :  { %p3617_p4 = pnand %p3616_p3, %p3610_p0 }
   0xd   :  { %3620 = shalt.err (!%p3617_p4)
}
   0xe   :  { %s3752_s12 = smov 256   ;;  %s3753_s13 = smov 16  }
   0xf   :  { %42 = dma.hbm_to_vmem [thread:$0]  %s4117_s1, 24576, %s37_s10, [#allocation7], %s3752_s12, %s3752_s12, %s3753_s13  }
  0x10   :  { %s3754_s16 = smov [#allocation9]  }
  0x11   :  { %s58_s17 = sshll.u32 %s3754_s16, 4  ;;  %s59_s17 = int_to_ptr.vmem [resolvable:$true] %s58_s17 }
  0x12   :  { %s3629_s18 = scalar_lea.vmem %s59_s17, 8192  ;;  %p3634_p6 = scmp.lt.s32.totalorder %s59_s17, %s59_s17 }
  0x13   :  { %p3630_p5 = scmp.ne.s32.totalorder %s59_s17, %s3629_s18  ;;  %p3635_p7 = scmp.lt.s32.totalorder %s3629_s18, %s3629_s18 }
  0x15   :  { %p3636_p8 = por %p3635_p7, %p3634_p6 }
  0x17   :  { %p3637_p9 = pnand %p3636_p8, %p3630_p5 }
  0x19   :  { %3640 = shalt.err (!%p3637_p9)
}
  0x1a   :  { %s3755_s19 = smov 128   ;;  %s3756_s20 = smov 8  }
  0x1b   :  { %64 = dma.hbm_to_vmem [thread:$0]  %s4119_s3, 8192, %s59_s17, [#allocation10], %s3755_s19, %s3755_s19, %s3756_s20  }
  0x1c   :  { %s3757_s23 = smov [#allocation3]  }
  0x1d   :  { %s24_s24 = sshll.u32 %s3757_s23, 4  ;;  %s25_s24 = int_to_ptr.vmem [resolvable:$true] %s24_s24 }
  0x1e   :  { %s3649_s1 = scalar_lea.vmem %s25_s24, 3072  ;;  %p3654_p11 = scmp.lt.s32.totalorder %s25_s24, %s25_s24 }
  0x1f   :  { %p3650_p10 = scmp.ne.s32.totalorder %s25_s24, %s3649_s1  ;;  %p3655_p12 = scmp.lt.s32.totalorder %s3649_s1, %s3649_s1 }
  0x21   :  { %p3656_p13 = por %p3655_p12, %p3654_p11 }
  0x23   :  { %p3657_p0 = pnand %p3656_p13, %p3650_p10 }
  0x25   :  { %3660 = shalt.err (!%p3657_p0)
}
  0x26   :  { %s3758_s25 = smov 384   ;;  %s3759_s26 = smov 24  }
  0x27   :  { %30 = dma.hbm_to_vmem [thread:$0]  %s4116_s0, 3072, %s25_s24, [#allocation4], %s3758_s25, %s3758_s25, %s3759_s26  }
  0x28   :  { %s3760_s29 = smov [#allocation8]   ;;  %s3761_s3 = smov [#allocation11]  }
  0x29   :  { %s49_s30 = sshll.u32 %s3760_s29, 4  ;;  %s72_s10 = sshll.u32 %s3761_s3, 4  ;;  %s50_s30 = int_to_ptr.vmem [resolvable:$true] %s49_s30  ;;  %s73_s10 = int_to_ptr.vmem [resolvable:$true] %s72_s10 }
  0x2a   :  { %s3669_s11 = scalar_lea.vmem %s50_s30, 64  ;;  %p3674_p2 = scmp.lt.s32.totalorder %s50_s30, %s50_s30 }
  0x2b   :  { %p3670_p1 = scmp.ne.s32.totalorder %s50_s30, %s3669_s11  ;;  %p3675_p3 = scmp.lt.s32.totalorder %s3669_s11, %s3669_s11 }
  0x2d   :  { %p3676_p4 = por %p3675_p3, %p3674_p2 }
  0x2f   :  { %p3677_p5 = pnand %p3676_p4, %p3670_p1 }
  0x31   :  { %3680 = shalt.err (!%p3677_p5)
}
  0x32   :  { %52 = dma.hbm_to_vmem [thread:$0]  %s4118_s2, 64, %s50_s30, [#allocation7]  }
  0x33   :  { %s3689_s14 = scalar_lea.vmem %s73_s10, 2048  ;;  %p3694_p7 = scmp.lt.s32.totalorder %s73_s10, %s73_s10 }
  0x34   :  { %p3690_p6 = scmp.ne.s32.totalorder %s73_s10, %s3689_s14  ;;  %p3695_p8 = scmp.lt.s32.totalorder %s3689_s14, %s3689_s14 }
  0x36   :  { %p3696_p9 = por %p3695_p8, %p3694_p7 }
  0x38   :  { %p3697_p10 = pnand %p3696_p9, %p3690_p6 }
  0x3a   :  { %3700 = shalt.err (!%p3697_p10)
}
  0x3b   :  { %s3762_s0 = smov 64   ;;  %s3763_s15 = smov 4  }
  0x3c   :  { %78 = dma.hbm_to_vmem [thread:$0]  %s4121_s5, 2048, %s73_s10, [#allocation10], %s3762_s0, %s3762_s0, %s3763_s15  }
  0x3d   :  { %s3764_s18 = smov [#allocation12]  }
  0x3e   :  { %s86_s19 = sshll.u32 %s3764_s18, 4  ;;  %s87_s19 = int_to_ptr.vmem [resolvable:$true] %s86_s19 }
  0x3f   :  { %s3709_s20 = scalar_lea.vmem %s87_s19, 1024  ;;  %p3714_p12 = scmp.lt.s32.totalorder %s87_s19, %s87_s19 }
  0x40   :  { %p3710_p11 = scmp.ne.s32.totalorder %s87_s19, %s3709_s20  ;;  %p3715_p13 = scmp.lt.s32.totalorder %s3709_s20, %s3709_s20 }
  0x42   :  { %p3716_p0 = por %p3715_p13, %p3714_p12 }
  0x44   :  { %p3717_p1 = pnand %p3716_p0, %p3710_p11 }
  0x46   :  { %3720 = shalt.err (!%p3717_p1)
}
  0x47   :  { %92 = dma.hbm_to_vmem [thread:$0]  %s4123_s7, 1024, %s87_s19, [#allocation13], %s3762_s0, %s3762_s0, %s3763_s15  }
  0x48   :  { %3741 = dma.done.wait [#allocation4], 3072  }
  0x49   :  { %3742 = vsyncadd [#allocation4], 4294964224 }
  0x4a   :  { %3743 = dma.done.wait [#allocation7], 24640  }
  0x4b   :  { %3744 = vsyncadd [#allocation7], 4294942656 }
  0x4c   :  { %3745 = dma.done.wait [#allocation10], 10240  }
  0x4d   :  { %3746 = vsyncadd [#allocation10], 4294957056 }
  0x4e   :  { %3747 = dma.done.wait [#allocation13], 1024  }
  0x4f   :  { %3748 = vsyncadd [#allocation13], 4294966272  ;;  %v3193_v0 = vld [vmem:[#allocation6 + $0xe4] ss:$16 sps:$4 sm:$0xff]   ;;  %v3197_v2 = vld [vmem:[#allocation6 + $0xe0] ss:$16 sps:$4 sm:$0xff]  }
  0x50   :  { %v3195_v1 = vld [vmem:[#allocation6 + $0x2e4] ss:$16 sps:$4 sm:$0xff]   ;;  %1800 = vmatprep.subr.bf16.mxu0 %v3193_v0  ;;  %v3198_v3 = vld [vmem:[#allocation6 + $0x2e0] ss:$16 sps:$4 sm:$0xff]   ;;  %v3838_v49 = vld [vmem:[#allocation3 + $0x18] sm:$0xff]  ;;  %vm538_vm0 = vcmask 1041409  }
  0x51   :  { %1841 = vmatprep.subr.bf16.mxu1 %v3195_v1  ;;  %v3199_v4 = vld [vmem:[#allocation6 + $0xc4] ss:$16 sps:$4 sm:$0xff]   ;;  %1801 = vmatpush1.bf16.msra.mxu0 %v3197_v2  ;;  %v3203_v6 = vld [vmem:[#allocation6 + $0xc0] ss:$16 sps:$4 sm:$0xff]   ;;  %v3842_v51 = vld [vmem:[#allocation3 + $0x48] sm:$0xff]  ;;  %v160_v57 = vunpack.c.l.bf16 %v3838_v49  ;;  %v161_v58 = vunpack.c.h.bf16 %v3838_v49  ;;  %vm540_vm1 = vcmask 1042434  }
  0x52   :  { %1842 = vmatpush1.bf16.msra.mxu1 %v3198_v3  ;;  %v3201_v5 = vld [vmem:[#allocation6 + $0x2c4] ss:$16 sps:$4 sm:$0xff]   ;;  %1802 = vmatprep.subr.bf16.mxu0 %v3199_v4  ;;  %v3204_v7 = vld [vmem:[#allocation6 + $0x2c0] ss:$16 sps:$4 sm:$0xff]   ;;  %v3848_v55 = vld [vmem:[#allocation3 + $0x78] sm:$0xff]  ;;  %v172_v0 = vunpack.c.l.bf16 %v3842_v51  ;;  %v173_v1 = vunpack.c.h.bf16 %v3842_v51  ;;  %vm542_vm2 = vcmask 1043459  }
  0x53   :  { %1843 = vmatprep.subr.bf16.mxu1 %v3201_v5  ;;  %v3205_v8 = vld [vmem:[#allocation6 + $0xa4] ss:$16 sps:$4 sm:$0xff]   ;;  %v3209_v10 = vld [vmem:[#allocation6 + $0xa0] ss:$16 sps:$4 sm:$0xff]   ;;  %v3856_v63 = vld [vmem:[#allocation3 + $0xa8] sm:$0xff]  ;;  %v184_v4 = vunpack.c.l.bf16 %v3848_v55  ;;  %v185_v5 = vunpack.c.h.bf16 %v3848_v55  ;;  %vm544_vm3 = vcmask 1044484  }
  0x54   :  { %v3207_v9 = vld [vmem:[#allocation6 + $0x2a4] ss:$16 sps:$4 sm:$0xff]   ;;  %v3210_v11 = vld [vmem:[#allocation6 + $0x2a0] ss:$16 sps:$4 sm:$0xff]   ;;  %vm546_vm4 = vcmask 1045509   ;;  %vm548_vm5 = vcmask 1046534  }
  0x55   :  { %1803 = vmatpush1.bf16.msra.mxu0 %v3203_v6  ;;  %v3211_v12 = vld [vmem:[#allocation6 + $0x84] ss:$16 sps:$4 sm:$0xff]   ;;  %v3215_v14 = vld [vmem:[#allocation6 + $0x80] ss:$16 sps:$4 sm:$0xff]   ;;  %vm550_vm6 = vcmask 1047559   ;;  %vm3766_vm7 = vmmov 0  }
  0x56   :  { %1844 = vmatpush1.bf16.msra.mxu1 %v3204_v7  ;;  %1804 = vmatprep.subr.bf16.mxu0 %v3205_v8  ;;  %v3213_v13 = vld [vmem:[#allocation6 + $0x284] ss:$16 sps:$4 sm:$0xff]   ;;  %v3216_v15 = vld [vmem:[#allocation6 + $0x280] ss:$16 sps:$4 sm:$0xff]   ;;  %s3767_s1 = smov [#allocation14]  }
  0x57   :  { %1845 = vmatprep.subr.bf16.mxu1 %v3207_v9  ;;  %v3217_v16 = vld [vmem:[#allocation6 + $0x64] ss:$16 sps:$4 sm:$0xff]   ;;  %v3221_v18 = vld [vmem:[#allocation6 + $0x60] ss:$16 sps:$4 sm:$0xff]   ;;  %s2831_s25 = sshll.u32 %s3767_s1, 4  ;;  %s2832_s25 = int_to_ptr.vmem [resolvable:$true] %s2831_s25 }
  0x58   :  { %v3219_v17 = vld [vmem:[#allocation6 + $0x264] ss:$16 sps:$4 sm:$0xff]   ;;  %v3222_v19 = vld [vmem:[#allocation6 + $0x260] ss:$16 sps:$4 sm:$0xff]   ;;  %p3726_p3 = scmp.lt.s32.totalorder %s2832_s25, %s2832_s25 }
  0x59   :  { %1805 = vmatpush1.bf16.msra.mxu0 %v3209_v10  ;;  %v3223_v20 = vld [vmem:[#allocation6 + $0x44] ss:$16 sps:$4 sm:$0xff]   ;;  %v3227_v22 = vld [vmem:[#allocation6 + $0x40] ss:$16 sps:$4 sm:$0xff]   ;;  %v196_v10 = vunpack.c.l.bf16 %v3856_v63 }
  0x5a   :  { %1846 = vmatpush1.bf16.msra.mxu1 %v3210_v11  ;;  %1806 = vmatprep.subr.bf16.mxu0 %v3211_v12  ;;  %v3225_v21 = vld [vmem:[#allocation6 + $0x244] ss:$16 sps:$4 sm:$0xff]   ;;  %v3228_v23 = vld [vmem:[#allocation6 + $0x240] ss:$16 sps:$4 sm:$0xff]   ;;  %v197_v11 = vunpack.c.h.bf16 %v3856_v63 }
  0x5b   :  { %1847 = vmatprep.subr.bf16.mxu1 %v3213_v13  ;;  %v3229_v24 = vld [vmem:[#allocation6 + $0x24] ss:$16 sps:$4 sm:$0xff]   ;;  %v3233_v26 = vld [vmem:[#allocation6 + $0x20] ss:$16 sps:$4 sm:$0xff]   ;;  %v244_v13 = vrot.slane %v161_v58, 4 }
  0x5c   :  { %v3231_v25 = vld [vmem:[#allocation6 + $0x224] ss:$16 sps:$4 sm:$0xff]   ;;  %v3234_v27 = vld [vmem:[#allocation6 + $0x220] ss:$16 sps:$4 sm:$0xff]  }
  0x5d   :  { %1807 = vmatpush1.bf16.msra.mxu0 %v3215_v14  ;;  %v3235_v28 = vld [vmem:[#allocation6 + $0x4] ss:$16 sps:$4 sm:$0xff]   ;;  %v3239_v30 = vld [vmem:[#allocation6] ss:$16 sps:$4 sm:$0xff]  }
  0x5e   :  { %1848 = vmatpush1.bf16.msra.mxu1 %v3216_v15  ;;  %1808 = vmatprep.subr.bf16.mxu0 %v3217_v16  ;;  %v3237_v29 = vld [vmem:[#allocation6 + $0x204] ss:$16 sps:$4 sm:$0xff]   ;;  %v3240_v31 = vld [vmem:[#allocation6 + $0x200] ss:$16 sps:$4 sm:$0xff]   ;;  %v316_v15 = vrot.slane %v173_v1, 4 }
  0x5f   :  { %1849 = vmatprep.subr.bf16.mxu1 %v3219_v17  ;;  %v3241_v32 = vld [vmem:[#allocation6 + $0x1e4] ss:$16 sps:$4 sm:$0xff]   ;;  %v3245_v34 = vld [vmem:[#allocation6 + $0x1e0] ss:$16 sps:$4 sm:$0xff]   ;;  %v388_v17 = vrot.slane %v185_v5, 4 }
  0x60   :  { %v3243_v33 = vld [vmem:[#allocation6 + $0x3e4] ss:$16 sps:$4 sm:$0xff]   ;;  %v3246_v35 = vld [vmem:[#allocation6 + $0x3e0] ss:$16 sps:$4 sm:$0xff]  }
  0x61   :  { %1809 = vmatpush1.bf16.msra.mxu0 %v3221_v18  ;;  %v3247_v36 = vld [vmem:[#allocation6 + $0x1c4] ss:$16 sps:$4 sm:$0xff]   ;;  %v3251_v38 = vld [vmem:[#allocation6 + $0x1c0] ss:$16 sps:$4 sm:$0xff]  }
  0x62   :  { %1850 = vmatpush1.bf16.msra.mxu1 %v3222_v19  ;;  %1810 = vmatprep.subr.bf16.mxu0 %v3223_v20  ;;  %v3249_v37 = vld [vmem:[#allocation6 + $0x3c4] ss:$16 sps:$4 sm:$0xff]   ;;  %v3252_v39 = vld [vmem:[#allocation6 + $0x3c0] ss:$16 sps:$4 sm:$0xff]  }
  0x63   :  { %1851 = vmatprep.subr.bf16.mxu1 %v3225_v21  ;;  %v3253_v40 = vld [vmem:[#allocation6 + $0x1a4] ss:$16 sps:$4 sm:$0xff]   ;;  %v3257_v42 = vld [vmem:[#allocation6 + $0x1a0] ss:$16 sps:$4 sm:$0xff]   ;;  %v245_v21 = vadd.f32 %v244_v13, %v161_v58 }
  0x64   :  { %v3255_v41 = vld [vmem:[#allocation6 + $0x3a4] ss:$16 sps:$4 sm:$0xff]   ;;  %v3258_v43 = vld [vmem:[#allocation6 + $0x3a0] ss:$16 sps:$4 sm:$0xff]  }
  0x65   :  { %1811 = vmatpush1.bf16.msra.mxu0 %v3227_v22  ;;  %v3259_v44 = vld [vmem:[#allocation6 + $0x184] ss:$16 sps:$4 sm:$0xff]   ;;  %v3263_v46 = vld [vmem:[#allocation6 + $0x180] ss:$16 sps:$4 sm:$0xff]  }
  0x66   :  { %1852 = vmatpush1.bf16.msra.mxu1 %v3228_v23  ;;  %1812 = vmatprep.subr.bf16.mxu0 %v3229_v24  ;;  %v3261_v45 = vld [vmem:[#allocation6 + $0x384] ss:$16 sps:$4 sm:$0xff]   ;;  %v3264_v47 = vld [vmem:[#allocation6 + $0x380] ss:$16 sps:$4 sm:$0xff]   ;;  %v460_v23 = vrot.slane %v197_v11, 4 }
  0x67   :  { %1853 = vmatprep.subr.bf16.mxu1 %v3231_v25  ;;  %v3836_v48 = vld [vmem:[#allocation3] sm:$0xff]  ;;  %v3840_v50 = vld [vmem:[#allocation3 + $0x30] sm:$0xff] }
  0x68   :  { %v154_v52 = vunpack.c.l.bf16 %v3836_v48  ;;  %v155_v53 = vunpack.c.h.bf16 %v3836_v48  ;;  %v3846_v54 = vld [vmem:[#allocation3 + $0x60] sm:$0xff]  ;;  %v3850_v56 = vld [vmem:[#allocation3 + $0x90] sm:$0xff]  ;;  %v166_v59 = vunpack.c.l.bf16 %v3840_v50  ;;  %v167_v60 = vunpack.c.h.bf16 %v3840_v50 }
  0x69   :  { %1813 = vmatpush1.bf16.msra.mxu0 %v3233_v26  ;;  %v3265_v61 = vld [vmem:[#allocation6 + $0x164] ss:$16 sps:$4 sm:$0xff]   ;;  %v178_v2 = vunpack.c.l.bf16 %v3846_v54  ;;  %v179_v3 = vunpack.c.h.bf16 %v3846_v54  ;;  %v190_v6 = vunpack.c.l.bf16 %v3850_v56  ;;  %v191_v7 = vunpack.c.h.bf16 %v3850_v56  ;;  %v3269_v8 = vld [vmem:[#allocation6 + $0x160] ss:$16 sps:$4 sm:$0xff]  }
  0x6a   :  { %1854 = vmatpush1.bf16.msra.mxu1 %v3234_v27  ;;  %1814 = vmatprep.subr.bf16.mxu0 %v3235_v28  ;;  %v3267_v62 = vld [vmem:[#allocation6 + $0x364] ss:$16 sps:$4 sm:$0xff]   ;;  %v3270_v9 = vld [vmem:[#allocation6 + $0x360] ss:$16 sps:$4 sm:$0xff]   ;;  %v208_v12 = vrot.slane %v155_v53, 4  ;;  %v280_v14 = vrot.slane %v167_v60, 4  ;;  %v317_v26 = vadd.f32 %v316_v15, %v173_v1  ;;  %v389_v28 = vadd.f32 %v388_v17, %v185_v5 }
  0x6b   :  { %1855 = vmatprep.subr.bf16.mxu1 %v3237_v29  ;;  %v352_v16 = vrot.slane %v179_v3, 4  ;;  %v3271_v18 = vld [vmem:[#allocation6 + $0x144] ss:$16 sps:$4 sm:$0xff]   ;;  %v424_v22 = vrot.slane %v191_v7, 4  ;;  %v3275_v24 = vld [vmem:[#allocation6 + $0x140] ss:$16 sps:$4 sm:$0xff]  }
  0x6c   :  { %v3273_v19 = vld [vmem:[#allocation6 + $0x344] ss:$16 sps:$4 sm:$0xff]   ;;  %v209_v20 = vadd.f32 %v208_v12, %v155_v53  ;;  %v281_v25 = vadd.f32 %v280_v14, %v167_v60  ;;  %v3276_v29 = vld [vmem:[#allocation6 + $0x340] ss:$16 sps:$4 sm:$0xff]   ;;  %v3868_v12 = vld [vmem:[#allocation3 + $0x8] sm:$0xff] }
  0x6d   :  { %1815 = vmatpush1.bf16.msra.mxu0 %v3239_v30  ;;  %v353_v27 = vadd.f32 %v352_v16, %v179_v3  ;;  %v3283_v60 = vld [vmem:[#allocation6 + $0x104] ss:$16 sps:$4 sm:$0xff]  }
  0x6e   :  { %1856 = vmatpush1.bf16.msra.mxu1 %v3240_v31  ;;  %1816 = vmatprep.subr.bf16.mxu0 %v3241_v32  ;;  %v210_v30 = vrot.slane %v209_v20, 2  ;;  %v246_v31 = vrot.slane %v245_v21, 2  ;;  %v425_v32 = vadd.f32 %v424_v22, %v191_v7  ;;  %v3870_v13 = vld [vmem:[#allocation3 + $0x20] sm:$0xff] }
  0x6f   :  { %1857 = vmatprep.subr.bf16.mxu1 %v3243_v33  ;;  %v461_v33 = vadd.f32 %v460_v23, %v197_v11 }
  0x71   :  { %1817 = vmatpush2.bf16.msra.mxu0 %v3245_v34  ;;  %v3277_v34 = vld [vmem:[#allocation6 + $0x124] ss:$16 sps:$4 sm:$0xff]  }
  0x72   :  { %1858 = vmatpush2.bf16.msra.mxu1 %v3246_v35  ;;  %1818 = vmatprep.subr.bf16.mxu0 %v3247_v36  ;;  %v282_v35 = vrot.slane %v281_v25, 2  ;;  %v318_v36 = vrot.slane %v317_v26, 2 }
  0x73   :  { %1859 = vmatprep.subr.bf16.mxu1 %v3249_v37  ;;  %v354_v37 = vrot.slane %v353_v27, 2 }
  0x75   :  { %1819 = vmatpush2.bf16.msra.mxu0 %v3251_v38  ;;  %v390_v38 = vrot.slane %v389_v28, 2  ;;  %v355_v53 = vadd.f32 %v354_v37, %v353_v27  ;;  %v163_v37 = vunpack.c.h.bf16 %v3870_v13 }
  0x76   :  { %1860 = vmatpush2.bf16.msra.mxu1 %v3252_v39  ;;  %1820 = vmatprep.subr.bf16.mxu0 %v3253_v40  ;;  %v3279_v39 = vld [vmem:[#allocation6 + $0x324] ss:$16 sps:$4 sm:$0xff]   ;;  %v211_v40 = vadd.f32 %v210_v30, %v209_v20  ;;  %v3288_v20 = vld [vmem:[#allocation6 + $0x300] ss:$16 sps:$4 sm:$0xff]  }
  0x77   :  { %1861 = vmatprep.subr.bf16.mxu1 %v3255_v41  ;;  %v247_v41 = vadd.f32 %v246_v31, %v245_v21  ;;  %v391_v58 = vadd.f32 %v390_v38, %v389_v28  ;;  %v3879_v30 = vld [vmem:[#allocation3 + $0x80] sm:$0xff]  ;;  %v156_v31 = vunpack.c.l.bf16 %v3868_v12 }
  0x79   :  { %1821 = vmatpush2.bf16.msra.mxu0 %v3257_v42  ;;  %v426_v42 = vrot.slane %v425_v32, 2  ;;  %v248_v1 = vrot.slane %v247_v41, 1  ;;  %v392_v11 = vrot.slane %v391_v58, 1 }
  0x7a   :  { %1862 = vmatpush2.bf16.msra.mxu1 %v3258_v43  ;;  %1822 = vmatprep.subr.bf16.mxu0 %v3259_v44  ;;  %v462_v43 = vrot.slane %v461_v33, 2  ;;  %v3281_v44 = vld [vmem:[#allocation6 + $0x120] ss:$16 sps:$4 sm:$0xff]  }
  0x7b   :  { %1863 = vmatprep.subr.bf16.mxu1 %v3261_v45  ;;  %v3282_v45 = vld [vmem:[#allocation6 + $0x320] ss:$16 sps:$4 sm:$0xff]   ;;  %v427_v3 = vadd.f32 %v426_v42, %v425_v32  ;;  %v249_v15 = vadd.f32 %v248_v1, %v247_v41  ;;  %v3291_v42 = vld [vmem:[#allocation6 + $0x4e4] ss:$16 sps:$4 sm:$0xff]  }
  0x7c   :  { %v463_v5 = vadd.f32 %v462_v43, %v461_v33  ;;  %v3883_v33 = vld [vmem:[#allocation3 + $0x98] sm:$0xff] }
  0x7d   :  { %1823 = vmatpush2.bf16.msra.mxu0 %v3263_v46  ;;  %v283_v46 = vadd.f32 %v282_v35, %v281_v25  ;;  %v428_v16 = vrot.slane %v427_v3, 1  ;;  %v3874_v25 = vld [vmem:[#allocation3 + $0x50] sm:$0xff]  ;;  %v157_v35 = vunpack.c.h.bf16 %v3868_v12  ;;  %v3294_v43 = vld [vmem:[#allocation6 + $0xec] ss:$16 sps:$4 sm:$0xff]   ;;  %v193_v1 = vunpack.c.h.bf16 %v3883_v33 }
  0x7e   :  { %1864 = vmatpush2.bf16.msra.mxu1 %v3264_v47  ;;  %1824 = vmatprep.subr.bf16.mxu0 %v3265_v61  ;;  %v319_v47 = vadd.f32 %v318_v36, %v317_v26  ;;  %v3285_v61 = vld [vmem:[#allocation6 + $0x304] ss:$16 sps:$4 sm:$0xff]   ;;  %v464_v17 = vrot.slane %v463_v5, 1  ;;  %v3876_v26 = vld [vmem:[#allocation3 + $0x68] sm:$0xff]  ;;  %v162_v36 = vunpack.c.l.bf16 %v3870_v13  ;;  %v174_v41 = vunpack.c.l.bf16 %v3874_v25 }
  0x7f   :  { %1865 = vmatprep.subr.bf16.mxu1 %v3267_v62  ;;  %v212_v62 = vrot.slane %v211_v40, 1  ;;  %v284_v7 = vrot.slane %v283_v46, 1  ;;  %v429_v27 = vadd.f32 %v428_v16, %v427_v3 }
  0x80   :  { %v465_v28 = vadd.f32 %v464_v17, %v463_v5 }
  0x81   :  { %1825 = vmatpush2.bf16.msra.mxu0 %v3269_v8  ;;  %v320_v8 = vrot.slane %v319_v47, 1  ;;  %v213_v14 = vadd.f32 %v212_v62, %v211_v40  ;;  %v285_v21 = vadd.f32 %v284_v7, %v283_v46 }
  0x82   :  { %1866 = vmatpush2.bf16.msra.mxu1 %v3270_v9  ;;  %1826 = vmatprep.subr.bf16.mxu0 %v3271_v18  ;;  %v356_v9 = vrot.slane %v355_v53, 1  ;;  %v3872_v18 = vld [vmem:[#allocation3 + $0x38] sm:$0xff] }
  0x83   :  { %1867 = vmatprep.subr.bf16.mxu1 %v3273_v19  ;;  %v3287_v19 = vld [vmem:[#allocation6 + $0x100] ss:$16 sps:$4 sm:$0xff]   ;;  %v321_v22 = vadd.f32 %v320_v8, %v319_v47  ;;  %v169_v40 = vunpack.c.h.bf16 %v3872_v18  ;;  %v181_v47 = vunpack.c.h.bf16 %v3876_v26  ;;  %v220_v8 = vrot.slane %v157_v35, 4 }
  0x84   :  { %v357_v23 = vadd.f32 %v356_v9, %v355_v53  ;;  %v256_v9 = vrot.slane %v163_v37, 4 }
  0x85   :  { %1827 = vmatpush2.bf16.msra.mxu0 %v3275_v24  ;;  %v393_v24 = vadd.f32 %v392_v11, %v391_v58  ;;  %v292_v11 = vrot.slane %v169_v40, 4  ;;  %v364_v16 = vrot.slane %v181_v47, 4 }
  0x86   :  { %1868 = vmatpush2.bf16.msra.mxu1 %v3276_v29  ;;  %1828 = vmatprep.subr.bf16.mxu0 %v3277_v34  ;;  %v552_v29 = vsel %vm538_vm0, %v249_v15, %v213_v14  ;;  %v3885_v34 = vld [vmem:[#allocation3 + $0xb0] sm:$0xff] }
  0x87   :  { %1869 = vmatprep.subr.bf16.mxu1 %v3279_v39  ;;  %v553_v32 = vsel %vm540_vm1, %v285_v21, %v552_v29  ;;  %v168_v39 = vunpack.c.l.bf16 %v3872_v18  ;;  %v199_v5 = vunpack.c.h.bf16 %v3885_v34  ;;  %v293_v21 = vadd.f32 %v292_v11, %v169_v40 }
  0x88   :  { %v554_v38 = vsel %vm542_vm2, %v321_v22, %v553_v32  ;;  %v436_v22 = vrot.slane %v193_v1, 4 }
  0x89   :  { %1829 = vmatpush2.bf16.msra.mxu0 %v3281_v44  ;;  %v555_v44 = vsel %vm544_vm3, %v357_v23, %v554_v38  ;;  %v294_v38 = vrot.slane %v293_v21, 2 }
  0x8a   :  { %1870 = vmatpush2.bf16.msra.mxu1 %v3282_v45  ;;  %1830 = vmatprep.subr.bf16.mxu0 %v3283_v60  ;;  %v175_v45 = vunpack.c.h.bf16 %v3874_v25  ;;  %v556_v53 = vsel %vm546_vm4, %v393_v24, %v555_v44  ;;  %v187_v60 = vunpack.c.h.bf16 %v3879_v30  ;;  %v437_v44 = vadd.f32 %v436_v22, %v193_v1 }
  0x8b   :  { %1871 = vmatprep.subr.bf16.mxu1 %v3285_v61  ;;  %v557_v62 = vsel %vm548_vm5, %v429_v27, %v556_v53  ;;  %v365_v27 = vadd.f32 %v364_v16, %v181_v47 }
  0x8c   :  { %v558_v7 = vsel %vm550_vm6, %v465_v28, %v557_v62  ;;  %v328_v15 = vrot.slane %v175_v45, 4  ;;  %v400_v17 = vrot.slane %v187_v60, 4  ;;  %v472_v62 = vrot.slane %v199_v5, 4 }
  0x8d   :  { %1831 = vmatpush2.bf16.msra.mxu0 %v3287_v19  ;;  %v615_v14 = vmul.f32 0.125, %v558_v7  ;;  %v221_v19 = vadd.f32 %v220_v8, %v157_v35  ;;  %v438_v40 = vrot.slane %v437_v44, 2 }
  0x8e   :  { %1872 = vmatpush2.bf16.msra.mxu1 %v3288_v20  ;;  %1882 = vmatprep.subr.bf16.mxu0 %v3291_v42  ;;  %v257_v20 = vadd.f32 %v256_v9, %v163_v37  ;;  %v329_v24 = vadd.f32 %v328_v15, %v175_v45  ;;  %v401_v29 = vadd.f32 %v400_v17, %v187_v60 }
  0x8f   :  { %1923 = vmatprep.subr.bf16.mxu1 %v3294_v43  ;;  %v3907_v23 = vpack.c.bf16 %v615_v14, %v615_v14  ;;  %v222_v32 = vrot.slane %v221_v19, 2  ;;  %v366_v43 = vrot.slane %v365_v27, 2  ;;  %v295_v37 = vadd.f32 %v294_v38, %v293_v21 }
  0x90   :  { %v258_v28 = vrot.slane %v257_v20, 2  ;;  %v330_v42 = vrot.slane %v329_v24, 2  ;;  %v402_v53 = vrot.slane %v401_v29, 2  ;;  %v473_v45 = vadd.f32 %v472_v62, %v199_v5 }
  0x91   :  { %1832 = vmatprep.mubr.bf16.mxu0 %v3907_v23  ;;  %v223_v7 = vadd.f32 %v222_v32, %v221_v19  ;;  %v367_v9 = vadd.f32 %v366_v43, %v365_v27  ;;  %v296_v14 = vrot.slane %v295_v37, 1  ;;  %v439_v15 = vadd.f32 %v438_v40, %v437_v44 }
  0x92   :  { %v259_v35 = vadd.f32 %v258_v28, %v257_v20  ;;  %v331_v8 = vadd.f32 %v330_v42, %v329_v24  ;;  %v403_v11 = vadd.f32 %v402_v53, %v401_v29  ;;  %v474_v22 = vrot.slane %v473_v45, 2 }
  0x93   :  { %v224_v47 = vrot.slane %v223_v7, 1  ;;  %v368_v1 = vrot.slane %v367_v9, 1  ;;  %v297_v58 = vadd.f32 %v296_v14, %v295_v37  ;;  %v440_v46 = vrot.slane %v439_v15, 1 }
  0x94   :  { %v260_v60 = vrot.slane %v259_v35, 1  ;;  %v332_v16 = vrot.slane %v331_v8, 1  ;;  %v404_v17 = vrot.slane %v403_v11, 1  ;;  %v475_v32 = vadd.f32 %v474_v22, %v473_v45 }
  0x95   :  { %v225_v3 = vadd.f32 %v224_v47, %v223_v7  ;;  %v369_v20 = vadd.f32 %v368_v1, %v367_v9  ;;  %v441_v24 = vadd.f32 %v440_v46, %v439_v15  ;;  %v202_v5 = vrot.slane %v154_v52, 4 }
  0x96   :  { %v261_v61 = vadd.f32 %v260_v60, %v259_v35  ;;  %v333_v19 = vadd.f32 %v332_v16, %v331_v8  ;;  %v405_v21 = vadd.f32 %v404_v17, %v403_v11  ;;  %v238_v29 = vrot.slane %v160_v57, 4 }
  0x97   :  { %v476_v28 = vrot.slane %v475_v32, 1  ;;  %v274_v44 = vrot.slane %v166_v59, 4  ;;  %v310_v42 = vrot.slane %v172_v0, 4  ;;  %v203_v46 = vadd.f32 %v202_v5, %v154_v52 }
  0x98   :  { %v566_v27 = vsel %vm538_vm0, %v261_v61, %v225_v3  ;;  %v239_v61 = vadd.f32 %v238_v29, %v160_v57  ;;  %v346_v3 = vrot.slane %v178_v2, 4  ;;  %v382_v8 = vrot.slane %v184_v4, 4 }
  0x99   :  { %v567_v38 = vsel %vm540_vm1, %v297_v58, %v566_v27  ;;  %v477_v53 = vadd.f32 %v476_v28, %v475_v32  ;;  %v275_v62 = vadd.f32 %v274_v44, %v166_v59  ;;  %v311_v7 = vadd.f32 %v310_v42, %v172_v0 }
  0x9a   :  { %v568_v43 = vsel %vm542_vm2, %v333_v19, %v567_v38  ;;  %v204_v37 = vrot.slane %v203_v46, 2  ;;  %v240_v48 = vrot.slane %v239_v61, 2  ;;  %v347_v49 = vadd.f32 %v346_v3, %v178_v2 }
  0x9b   :  { %v569_v58 = vsel %vm544_vm3, %v369_v20, %v568_v43  ;;  %v276_v57 = vrot.slane %v275_v62, 2  ;;  %v312_v40 = vrot.slane %v311_v7, 2  ;;  %v383_v47 = vadd.f32 %v382_v8, %v184_v4 }
  0x9c   :  { %v570_v35 = vsel %vm546_vm4, %v405_v21, %v569_v58  ;;  %v205_v59 = vadd.f32 %v204_v37, %v203_v46  ;;  %v241_v9 = vadd.f32 %v240_v48, %v239_v61  ;;  %v348_v51 = vrot.slane %v347_v49, 2 }
  0x9d   :  { %v571_v52 = vsel %vm548_vm5, %v441_v24, %v570_v35  ;;  %v277_v11 = vadd.f32 %v276_v57, %v275_v62  ;;  %v313_v45 = vadd.f32 %v312_v40, %v311_v7  ;;  %v418_v14 = vrot.slane %v190_v6, 4 }
  0x9e   :  { %v572_v50 = vsel %vm550_vm6, %v477_v53, %v571_v52  ;;  %v206_v54 = vrot.slane %v205_v59, 1  ;;  %v242_v2 = vrot.slane %v241_v9, 1  ;;  %v349_v60 = vadd.f32 %v348_v51, %v347_v49 }
  0x9f   :  { %v617_v0 = vmul.f32 0.125, %v572_v50  ;;  %v278_v16 = vrot.slane %v277_v11, 1  ;;  %v314_v1 = vrot.slane %v313_v45, 1  ;;  %v384_v17 = vrot.slane %v383_v47, 2 }
  0xa0   :  { %v207_v22 = vadd.f32 %v206_v54, %v205_v59  ;;  %v243_v19 = vadd.f32 %v242_v2, %v241_v9  ;;  %v350_v20 = vrot.slane %v349_v60, 1  ;;  %v419_v21 = vadd.f32 %v418_v14, %v190_v6 }
  0xa1   :  { %v3943_v15 = vpack.c.bf16 %v617_v0, %v617_v0  ;;  %v279_v55 = vadd.f32 %v278_v16, %v277_v11  ;;  %v315_v4 = vadd.f32 %v314_v1, %v313_v45  ;;  %v385_v32 = vadd.f32 %v384_v17, %v383_v47 }
  0xa2   :  { %v454_v24 = vrot.slane %v196_v10, 4  ;;  %v351_v27 = vadd.f32 %v350_v20, %v349_v60  ;;  %v420_v5 = vrot.slane %v419_v21, 2  ;;  %v539_v29 = vsel %vm538_vm0, %v243_v19, %v207_v22 }
  0xa3   :  { %1873 = vmatprep.mubr.bf16.mxu1 %v3943_v15  ;;  %v214_v28 = vrot.slane %v156_v31, 4  ;;  %v386_v38 = vrot.slane %v385_v32, 1  ;;  %v541_v6 = vsel %vm540_vm1, %v279_v55, %v539_v29  ;;  %v250_v44 = vrot.slane %v162_v36, 4 }
  0xa4   :  { %v455_v56 = vadd.f32 %v454_v24, %v196_v10  ;;  %v421_v42 = vadd.f32 %v420_v5, %v419_v21  ;;  %v543_v43 = vsel %vm542_vm2, %v315_v4, %v541_v6  ;;  %v286_v61 = vrot.slane %v168_v39, 4  ;;  %v3289_v24 = vld [vmem:[#allocation6 + $0x4e0] ss:$16 sps:$4 sm:$0xff]  }
  0xa5   :  { %v215_v46 = vadd.f32 %v214_v28, %v156_v31  ;;  %v387_v3 = vadd.f32 %v386_v38, %v385_v32  ;;  %v545_v58 = vsel %vm544_vm3, %v351_v27, %v543_v43  ;;  %v251_v63 = vadd.f32 %v250_v44, %v162_v36  ;;  %v3990_v38 = vld [vmem:[#allocation3 + $0x10] sm:$0xff] }
  0xa6   :  { %v456_v53 = vrot.slane %v455_v56, 2  ;;  %v422_v10 = vrot.slane %v421_v42, 1  ;;  %v287_v7 = vadd.f32 %v286_v61, %v168_v39  ;;  %v322_v35 = vrot.slane %v174_v41, 4  ;;  %v3297_v43 = vld [vmem:[#allocation6 + $0x4c4] ss:$16 sps:$4 sm:$0xff]  }
  0xa7   :  { %v216_v62 = vrot.slane %v215_v46, 2  ;;  %v547_v31 = vsel %vm546_vm4, %v387_v3, %v545_v58  ;;  %v252_v37 = vrot.slane %v251_v63, 2  ;;  %v4126_v48 = vunpack.c.l.bf16 %v3876_v26  ;;  %v3295_v58 = vld [vmem:[#allocation6 + $0x4c0] ss:$16 sps:$4 sm:$0xff]  }
  0xa8   :  { %v457_v12 = vadd.f32 %v456_v53, %v455_v56  ;;  %v423_v52 = vadd.f32 %v422_v10, %v421_v42  ;;  %v288_v40 = vrot.slane %v287_v7, 2  ;;  %v323_v13 = vadd.f32 %v322_v35, %v174_v41  ;;  %v4001_v10 = vld [vmem:[#allocation3 + $0x58] sm:$0xff]  ;;  %v4005_v35 = vld [vmem:[#allocation3 + $0x70] sm:$0xff] }
  0xa9   :  { %v358_v49 = vrot.slane %v4126_v48, 4  ;;  %v217_v57 = vadd.f32 %v216_v62, %v215_v46  ;;  %v253_v8 = vadd.f32 %v252_v37, %v251_v63  ;;  %v4127_v18 = vmov %v4126_v48  ;;  %v3995_v46 = vld [vmem:[#allocation3 + $0x28] sm:$0xff]  ;;  %v3999_v63 = vld [vmem:[#allocation3 + $0x40] sm:$0xff] }
  0xaa   :  { %v458_v36 = vrot.slane %v457_v12, 1  ;;  %v4128_v50 = vunpack.c.l.bf16 %v3879_v30  ;;  %v549_v9 = vsel %vm548_vm5, %v423_v52, %v547_v31  ;;  %v289_v0 = vadd.f32 %v288_v40, %v287_v7  ;;  %v3303_v40 = vld [vmem:[#allocation6 + $0x4a4] ss:$16 sps:$4 sm:$0xff]  }
  0xab   :  { %v359_v39 = vadd.f32 %v358_v49, %v4127_v18  ;;  %v218_v51 = vrot.slane %v217_v57, 1  ;;  %v324_v11 = vrot.slane %v323_v13, 2  ;;  %v254_v47 = vrot.slane %v253_v8, 1  ;;  %v4010_v49 = vld [vmem:[#allocation3 + $0x88] sm:$0xff] }
  0xac   :  { %v394_v59 = vrot.slane %v4128_v50, 4  ;;  %v459_v45 = vadd.f32 %v458_v36, %v457_v12  ;;  %v4129_v2 = vmov %v4128_v50  ;;  %v290_v60 = vrot.slane %v289_v0, 1 }
  0xad   :  { %v360_v54 = vrot.slane %v359_v39, 2  ;;  %v219_v41 = vadd.f32 %v218_v51, %v217_v57  ;;  %v325_v14 = vadd.f32 %v324_v11, %v323_v13  ;;  %v4130_v26 = vunpack.c.l.bf16 %v3883_v33  ;;  %v4013_v13 = vld [vmem:[#allocation3 + $0xa0] sm:$0xff] }
  0xae   :  { %v395_v25 = vadd.f32 %v394_v59, %v4129_v2  ;;  %v551_v1 = vsel %vm550_vm6, %v459_v45, %v549_v9  ;;  %v255_v17 = vadd.f32 %v254_v47, %v253_v8  ;;  %v291_v21 = vadd.f32 %v290_v60, %v289_v0  ;;  %v4019_v59 = vld [vmem:[#allocation3 + $0xb8] sm:$0xff]  ;;  %v3301_v2 = vld [vmem:[#allocation6 + $0x4a0] ss:$16 sps:$4 sm:$0xff]  }
  0xaf   :  { %v430_v16 = vrot.slane %v4130_v26, 4  ;;  %v361_v22 = vadd.f32 %v360_v54, %v359_v39  ;;  %v614_v20 = vmul.f32 0.125, %v551_v1  ;;  %v326_v55 = vrot.slane %v325_v14, 1 }
  0xb0   :  { %v396_v19 = vrot.slane %v395_v25, 2  ;;  %v4131_v4 = vmov %v4130_v26  ;;  %v4132_v5 = vunpack.c.l.bf16 %v3885_v34  ;;  %v559_v28 = vsel %vm538_vm0, %v255_v17, %v219_v41  ;;  %v3309_v26 = vld [vmem:[#allocation6 + $0x484] ss:$16 sps:$4 sm:$0xff]  }
  0xb1   :  { %v431_v32 = vadd.f32 %v430_v16, %v4131_v4  ;;  %v362_v30 = vrot.slane %v361_v22, 1  ;;  %v3992_v56 = vpack.c.bf16 %v614_v20, %v614_v20  ;;  %v327_v6 = vadd.f32 %v326_v55, %v325_v14 }
  0xb2   :  { %v397_v27 = vadd.f32 %v396_v19, %v395_v25  ;;  %v466_v29 = vrot.slane %v4132_v5, 4  ;;  %v560_v42 = vsel %vm540_vm1, %v291_v21, %v559_v28  ;;  %v4133_v3 = vmov %v4132_v5  ;;  %v3315_v5 = vld [vmem:[#allocation6 + $0x464] ss:$16 sps:$4 sm:$0xff]  }
  0xb3   :  { %v432_v44 = vrot.slane %v431_v32, 2  ;;  %v363_v33 = vadd.f32 %v362_v30, %v361_v22  ;;  %1833 = vmatmul.mubr.bf16.vlgmr.msra.gmra.mxu0 %v3992_v56  ;;  %v561_v7 = vsel %vm542_vm2, %v327_v6, %v560_v42  ;;  %v158_v12 = vunpack.c.l.bf16 %v3990_v38 }
  0xb4   :  { %v398_v61 = vrot.slane %v397_v27, 1  ;;  %v467_v53 = vadd.f32 %v466_v29, %v4133_v3  ;;  %v159_v31 = vunpack.c.h.bf16 %v3990_v38  ;;  %1883 = vmatpush1.bf16.msra.mxu0 %v3289_v24  ;;  %v164_v52 = vunpack.c.l.bf16 %v3995_v46 }
  0xb5   :  { %v433_v62 = vadd.f32 %v432_v44, %v431_v32  ;;  %v562_v34 = vsel %vm544_vm3, %v363_v33, %v561_v7  ;;  %1884 = vmatprep.subr.bf16.mxu0 %v3297_v43  ;;  %v165_v36 = vunpack.c.h.bf16 %v3995_v46  ;;  %v170_v8 = vunpack.c.l.bf16 %v3999_v63 }
  0xb6   :  { %v399_v37 = vadd.f32 %v398_v61, %v397_v27  ;;  %v468_v48 = vrot.slane %v467_v53, 2  ;;  %v171_v18 = vunpack.c.h.bf16 %v3999_v63  ;;  %v176_v9 = vunpack.c.l.bf16 %v4001_v10  ;;  %v3307_v27 = vld [vmem:[#allocation6 + $0x480] ss:$16 sps:$4 sm:$0xff]   ;;  %v3292_v61 = vld [vmem:[#allocation6 + $0xe8] ss:$16 sps:$4 sm:$0xff]  }
  0xb7   :  { %v434_v57 = vrot.slane %v433_v62, 1  ;;  %v177_v51 = vunpack.c.h.bf16 %v4001_v10  ;;  %v182_v11 = vunpack.c.l.bf16 %v4005_v35  ;;  %v183_v45 = vunpack.c.h.bf16 %v4005_v35  ;;  %v3318_v63 = vld [vmem:[#allocation6 + $0x6c] ss:$16 sps:$4 sm:$0xff]   ;;  %v3316_v35 = vld [vmem:[#allocation6 + $0x68] ss:$16 sps:$4 sm:$0xff]  }
  0xb8   :  { %v469_v39 = vadd.f32 %v468_v48, %v467_v53  ;;  %v563_v50 = vsel %vm546_vm4, %v399_v37, %v562_v34  ;;  %v189_v47 = vunpack.c.h.bf16 %v4010_v49  ;;  %1885 = vmatpush1.bf16.msra.mxu0 %v3295_v58  ;;  %v188_v25 = vunpack.c.l.bf16 %v4010_v49 }
  0xb9   :  { %v435_v0 = vadd.f32 %v434_v57, %v433_v62  ;;  %v194_v41 = vunpack.c.l.bf16 %v4013_v13  ;;  %v195_v60 = vunpack.c.h.bf16 %v4013_v13  ;;  %1886 = vmatprep.subr.bf16.mxu0 %v3303_v40  ;;  %v201_v16 = vunpack.c.h.bf16 %v4019_v59  ;;  %v3313_v57 = vld [vmem:[#allocation6 + $0x460] ss:$16 sps:$4 sm:$0xff]  }
  0xba   :  { %v470_v54 = vrot.slane %v469_v39, 1  ;;  %v232_v1 = vrot.slane %v159_v31, 4  ;;  %v268_v17 = vrot.slane %v165_v36, 4  ;;  %v304_v19 = vrot.slane %v171_v18, 4 }
  0xbb   :  { %v564_v14 = vsel %vm548_vm5, %v435_v0, %v563_v50  ;;  %v340_v20 = vrot.slane %v177_v51, 4  ;;  %v376_v21 = vrot.slane %v183_v45, 4  ;;  %v412_v32 = vrot.slane %v189_v47, 4  ;;  %v3321_v50 = vld [vmem:[#allocation6 + $0x444] ss:$16 sps:$4 sm:$0xff]  }
  0xbc   :  { %v471_v22 = vadd.f32 %v470_v54, %v469_v39  ;;  %v233_v55 = vadd.f32 %v232_v1, %v159_v31  ;;  %v269_v4 = vadd.f32 %v268_v17, %v165_v36  ;;  %v448_v24 = vrot.slane %v195_v60, 4  ;;  %1887 = vmatpush1.bf16.msra.mxu0 %v3301_v2  ;;  %v3300_v31 = vld [vmem:[#allocation6 + $0xcc] ss:$16 sps:$4 sm:$0xff]   ;;  %v3298_v54 = vld [vmem:[#allocation6 + $0xc8] ss:$16 sps:$4 sm:$0xff]  }
  0xbd   :  { %v305_v29 = vadd.f32 %v304_v19, %v171_v18  ;;  %v341_v28 = vadd.f32 %v340_v20, %v177_v51  ;;  %v377_v6 = vadd.f32 %v376_v21, %v183_v45  ;;  %1888 = vmatprep.subr.bf16.mxu0 %v3309_v26  ;;  %v413_v33 = vadd.f32 %v412_v32, %v189_v47  ;;  %v3306_v1 = vld [vmem:[#allocation6 + $0xac] ss:$16 sps:$4 sm:$0xff]   ;;  %v3319_v21 = vld [vmem:[#allocation6 + $0x440] ss:$16 sps:$4 sm:$0xff]  }
  0xbe   :  { %v565_v30 = vsel %vm550_vm6, %v471_v22, %v564_v14  ;;  %v234_v42 = vrot.slane %v233_v55, 2  ;;  %v270_v43 = vrot.slane %v269_v4, 2  ;;  %v449_v62 = vadd.f32 %v448_v24, %v195_v60 }
  0xbf   :  { %v616_v44 = vmul.f32 0.125, %v565_v30  ;;  %v306_v3 = vrot.slane %v305_v29, 2  ;;  %v342_v53 = vrot.slane %v341_v28, 2  ;;  %v378_v58 = vrot.slane %v377_v6, 2  ;;  %v3327_v30 = vld [vmem:[#allocation6 + $0x424] ss:$16 sps:$4 sm:$0xff]  }
  0xc0   :  { %v235_v37 = vadd.f32 %v234_v42, %v233_v55  ;;  %v271_v48 = vadd.f32 %v270_v43, %v269_v4  ;;  %v414_v34 = vrot.slane %v413_v33, 2  ;;  %1889 = vmatpush1.bf16.msra.mxu0 %v3307_v27  ;;  %v450_v39 = vrot.slane %v449_v62, 2  ;;  %v3312_v43 = vld [vmem:[#allocation6 + $0x8c] ss:$16 sps:$4 sm:$0xff]  }
  0xc1   :  { %v4032_v7 = vpack.c.bf16 %v616_v44, %v616_v44  ;;  %v307_v40 = vadd.f32 %v306_v3, %v305_v29  ;;  %v343_v36 = vadd.f32 %v342_v53, %v341_v28  ;;  %v379_v18 = vadd.f32 %v378_v58, %v377_v6  ;;  %1890 = vmatprep.subr.bf16.mxu0 %v3315_v5  ;;  %v3304_v28 = vld [vmem:[#allocation6 + $0xa8] ss:$16 sps:$4 sm:$0xff]   ;;  %v3325_v58 = vld [vmem:[#allocation6 + $0x420] ss:$16 sps:$4 sm:$0xff]  }
  0xc2   :  { %v236_v51 = vrot.slane %v235_v37, 1  ;;  %v272_v0 = vrot.slane %v271_v48, 1  ;;  %v415_v45 = vadd.f32 %v414_v34, %v413_v33  ;;  %v484_v47 = vrot.slane %v201_v16, 4  ;;  %v3333_v34 = vld [vmem:[#allocation6 + $0x404] ss:$16 sps:$4 sm:$0xff]  }
  0xc3   :  { %1874 = vmatmul.mubr.bf16.vlgmr.msra.gmra.mxu1 %v4032_v7  ;;  %v308_v2 = vrot.slane %v307_v40, 1  ;;  %v344_v60 = vrot.slane %v343_v36, 1  ;;  %v380_v14 = vrot.slane %v379_v18, 1  ;;  %v451_v26 = vadd.f32 %v450_v39, %v449_v62 }
  0xc4   :  { %1924 = vmatpush1.bf16.msra.mxu1 %v3292_v61  ;;  %1955 = vmatprep.mubr.bf16.mxu1 %v3907_v23  ;;  %v237_v17 = vadd.f32 %v236_v51, %v235_v37  ;;  %v273_v22 = vadd.f32 %v272_v0, %v271_v48  ;;  %v416_v19 = vrot.slane %v415_v45, 1  ;;  %v485_v20 = vadd.f32 %v484_v47, %v201_v16  ;;  %v3331_v0 = vld [vmem:[#allocation6 + $0x400] ss:$16 sps:$4 sm:$0xff]  }
  0xc5   :  { %1925 = vmatprep.subr.bf16.mxu1 %v3300_v31  ;;  %1891 = vmatpush1.bf16.msra.mxu0 %v3313_v57  ;;  %v309_v55 = vadd.f32 %v308_v2, %v307_v40  ;;  %v345_v4 = vadd.f32 %v344_v60, %v343_v36  ;;  %v381_v32 = vadd.f32 %v380_v14, %v379_v18  ;;  %v452_v24 = vrot.slane %v451_v26, 1  ;;  %v3310_v36 = vld [vmem:[#allocation6 + $0x88] ss:$16 sps:$4 sm:$0xff]  }
  0xc6   :  { %1892 = vmatprep.subr.bf16.mxu0 %v3321_v50  ;;  %v417_v27 = vadd.f32 %v416_v19, %v415_v45  ;;  %v486_v5 = vrot.slane %v485_v20, 2  ;;  %v580_v29 = vsel %vm538_vm0, %v273_v22, %v237_v17  ;;  %v226_v23 = vrot.slane %v158_v12, 4  ;;  %v3339_v45 = vld [vmem:[#allocation6 + $0x5e4] ss:$16 sps:$4 sm:$0xff]   ;;  %v3324_v17 = vld [vmem:[#allocation6 + $0x4c] ss:$16 sps:$4 sm:$0xff]  }
  0xc7   :  { %v453_v6 = vadd.f32 %v452_v24, %v451_v26  ;;  %v581_v16 = vsel %vm540_vm1, %v309_v55, %v580_v29  ;;  %v262_v44 = vrot.slane %v164_v52, 4  ;;  %v298_v42 = vrot.slane %v170_v8, 4  ;;  %v3337_v19 = vld [vmem:[#allocation6 + $0x5e0] ss:$16 sps:$4 sm:$0xff]   ;;  %v3322_v24 = vld [vmem:[#allocation6 + $0x48] ss:$16 sps:$4 sm:$0xff]  }
  0xc8   :  { %1926 = vmatpush1.bf16.msra.mxu1 %v3298_v54  ;;  %v487_v33 = vadd.f32 %v486_v5, %v485_v20  ;;  %v582_v61 = vsel %vm542_vm2, %v345_v4, %v581_v16  ;;  %v227_v3 = vadd.f32 %v226_v23, %v158_v12  ;;  %v334_v53 = vrot.slane %v176_v9, 4  ;;  %v3343_v29 = vld [vmem:[#allocation6 + $0x5c0] ss:$16 sps:$4 sm:$0xff]  }
  0xc9   :  { %1927 = vmatprep.subr.bf16.mxu1 %v3306_v1  ;;  %1893 = vmatpush1.bf16.msra.mxu0 %v3319_v21  ;;  %v583_v62 = vsel %vm544_vm3, %v381_v32, %v582_v61  ;;  %v263_v31 = vadd.f32 %v262_v44, %v164_v52  ;;  %v299_v37 = vadd.f32 %v298_v42, %v170_v8  ;;  %v370_v48 = vrot.slane %v182_v11, 4  ;;  %v3345_v21 = vld [vmem:[#allocation6 + $0x5c4] ss:$16 sps:$4 sm:$0xff]   ;;  %v3334_v61 = vld [vmem:[#allocation6 + $0x8] ss:$16 sps:$4 sm:$0xff]  }
  0xca   :  { %1894 = vmatprep.subr.bf16.mxu0 %v3327_v30  ;;  %v488_v38 = vrot.slane %v487_v33, 1  ;;  %v584_v12 = vsel %vm546_vm4, %v417_v27, %v583_v62  ;;  %v228_v57 = vrot.slane %v227_v3, 2  ;;  %v335_v40 = vadd.f32 %v334_v53, %v176_v9  ;;  %v3330_v27 = vld [vmem:[#allocation6 + $0x2c] ss:$16 sps:$4 sm:$0xff]   ;;  %v3357_v62 = vld [vmem:[#allocation6 + $0x584] ss:$16 sps:$4 sm:$0xff]  }
  0xcb   :  { %v585_v46 = vsel %vm548_vm5, %v453_v6, %v584_v12  ;;  %v264_v52 = vrot.slane %v263_v31, 2  ;;  %v300_v18 = vrot.slane %v299_v37, 2  ;;  %v371_v50 = vadd.f32 %v370_v48, %v182_v11  ;;  %v3351_v6 = vld [vmem:[#allocation6 + $0x5a4] ss:$16 sps:$4 sm:$0xff]   ;;  %v3342_v48 = vld [vmem:[#allocation6 + $0x1ec] ss:$16 sps:$4 sm:$0xff]  }
  0xcc   :  { %1928 = vmatpush1.bf16.msra.mxu1 %v3304_v28  ;;  %v489_v8 = vadd.f32 %v488_v38, %v487_v33  ;;  %v229_v39 = vadd.f32 %v228_v57, %v227_v3  ;;  %v406_v51 = vrot.slane %v188_v25, 4  ;;  %v336_v9 = vrot.slane %v335_v40, 2  ;;  %v3349_v3 = vld [vmem:[#allocation6 + $0x5a0] ss:$16 sps:$4 sm:$0xff]   ;;  %v3363_v12 = vld [vmem:[#allocation6 + $0x564] ss:$16 sps:$4 sm:$0xff]  }
  0xcd   :  { %1929 = vmatprep.subr.bf16.mxu1 %v3312_v43  ;;  %1895 = vmatpush1.bf16.msra.mxu0 %v3325_v58  ;;  %v265_v10 = vadd.f32 %v264_v52, %v263_v31  ;;  %v200_v47 = vunpack.c.l.bf16 %v4019_v59  ;;  %v301_v2 = vadd.f32 %v300_v18, %v299_v37  ;;  %v442_v60 = vrot.slane %v194_v41, 4  ;;  %v3336_v43 = vld [vmem:[#allocation6 + $0xc] ss:$16 sps:$4 sm:$0xff]  }
  0xce   :  { %1896 = vmatprep.subr.bf16.mxu0 %v3333_v34  ;;  %v586_v54 = vsel %vm550_vm6, %v489_v8, %v585_v46  ;;  %v230_v14 = vrot.slane %v229_v39, 1  ;;  %v407_v1 = vadd.f32 %v406_v51, %v188_v25  ;;  %v372_v22 = vrot.slane %v371_v50, 2  ;;  %v3355_v34 = vld [vmem:[#allocation6 + $0x580] ss:$16 sps:$4 sm:$0xff]   ;;  %v3348_v52 = vld [vmem:[#allocation6 + $0x1cc] ss:$16 sps:$4 sm:$0xff]  }
  0xcf   :  { %v619_v11 = vmul.f32 0.125, %v586_v54  ;;  %v266_v26 = vrot.slane %v265_v10, 1  ;;  %v337_v20 = vadd.f32 %v336_v9, %v335_v40  ;;  %v302_v55 = vrot.slane %v301_v2, 1  ;;  %v3340_v40 = vld [vmem:[#allocation6 + $0x1e8] ss:$16 sps:$4 sm:$0xff]  }
  0xd0   :  { %1930 = vmatpush1.bf16.msra.mxu1 %v3310_v36  ;;  %v443_v4 = vadd.f32 %v442_v60, %v194_v41  ;;  %v478_v32 = vrot.slane %v200_v47, 4  ;;  %v231_v49 = vadd.f32 %v230_v14, %v229_v39  ;;  %v408_v30 = vrot.slane %v407_v1, 2  ;;  %v3328_v41 = vld [vmem:[#allocation6 + $0x28] ss:$16 sps:$4 sm:$0xff]   ;;  %v3369_v39 = vld [vmem:[#allocation6 + $0x544] ss:$16 sps:$4 sm:$0xff]  }
  0xd1   :  { %1931 = vmatprep.subr.bf16.mxu1 %v3318_v63  ;;  %1897 = vmatpush1.bf16.msra.mxu0 %v3331_v0  ;;  %v4070_v59 = vpack.c.bf16 %v619_v11, %v619_v11  ;;  %v267_v25 = vadd.f32 %v266_v26, %v265_v10  ;;  %v373_v5 = vadd.f32 %v372_v22, %v371_v50  ;;  %v338_v23 = vrot.slane %v337_v20, 1  ;;  %v3361_v63 = vld [vmem:[#allocation6 + $0x560] ss:$16 sps:$4 sm:$0xff]   ;;  %v3346_v51 = vld [vmem:[#allocation6 + $0x1c8] ss:$16 sps:$4 sm:$0xff]  }
  0xd2   :  { %1898 = vmatprep.subr.bf16.mxu0 %v3339_v45  ;;  %v479_v28 = vadd.f32 %v478_v32, %v200_v47  ;;  %v303_v16 = vadd.f32 %v302_v55, %v301_v2  ;;  %v444_v13 = vrot.slane %v443_v4, 2  ;;  %v409_v44 = vadd.f32 %v408_v30, %v407_v1  ;;  %v3354_v10 = vld [vmem:[#allocation6 + $0x1ac] ss:$16 sps:$4 sm:$0xff]   ;;  %v3367_v45 = vld [vmem:[#allocation6 + $0x540] ss:$16 sps:$4 sm:$0xff]  }
  0xd3   :  { %1914 = vmatprep.mubr.bf16.mxu0 %v4070_v59  ;;  %v573_v42 = vsel %vm538_vm0, %v267_v25, %v231_v49  ;;  %v374_v33 = vrot.slane %v373_v5, 1  ;;  %v339_v53 = vadd.f32 %v338_v23, %v337_v20  ;;  %v3375_v54 = vld [vmem:[#allocation6 + $0x524] ss:$16 sps:$4 sm:$0xff]   ;;  %v3352_v2 = vld [vmem:[#allocation6 + $0x1a8] ss:$16 sps:$4 sm:$0xff]  }
  0xd4   :  { %1932 = vmatpush1.bf16.msra.mxu1 %v3316_v35  ;;  %v480_v58 = vrot.slane %v479_v28, 2  ;;  %v445_v31 = vadd.f32 %v444_v13, %v443_v4  ;;  %v574_v37 = vsel %vm540_vm1, %v303_v16, %v573_v42  ;;  %v410_v38 = vrot.slane %v409_v44, 1  ;;  %v3360_v35 = vld [vmem:[#allocation6 + $0x18c] ss:$16 sps:$4 sm:$0xff]   ;;  %v3373_v14 = vld [vmem:[#allocation6 + $0x520] ss:$16 sps:$4 sm:$0xff]  }
  0xd5   :  { %1933 = vmatprep.subr.bf16.mxu1 %v3324_v17  ;;  %1899 = vmatpush2.bf16.msra.mxu0 %v3337_v19  ;;  %v375_v57 = vadd.f32 %v374_v33, %v373_v5  ;;  %v575_v46 = vsel %vm542_vm2, %v339_v53, %v574_v37  ;;  %v3381_v26 = vld [vmem:[#allocation6 + $0x504] ss:$16 sps:$4 sm:$0xff]   ;;  %v3358_v1 = vld [vmem:[#allocation6 + $0x188] ss:$16 sps:$4 sm:$0xff]   ;;  %v3366_v22 = vld [vmem:[#allocation6 + $0x16c] ss:$16 sps:$4 sm:$0xff]  }
  0xd6   :  { %1900 = vmatprep.subr.bf16.mxu0 %v3345_v21  ;;  %v481_v36 = vadd.f32 %v480_v58, %v479_v28  ;;  %v446_v18 = vrot.slane %v445_v31, 1  ;;  %v411_v8 = vadd.f32 %v410_v38, %v409_v44  ;;  %v3379_v19 = vld [vmem:[#allocation6 + $0x500] ss:$16 sps:$4 sm:$0xff]   ;;  %v3387_v21 = vld [vmem:[#allocation6 + $0x2ec] ss:$16 sps:$4 sm:$0xff]  }
  0xd7   :  { %v576_v50 = vsel %vm544_vm3, %v375_v57, %v575_v46  ;;  %v3364_v55 = vld [vmem:[#allocation6 + $0x168] ss:$16 sps:$4 sm:$0xff]   ;;  %v3372_v4 = vld [vmem:[#allocation6 + $0x14c] ss:$16 sps:$4 sm:$0xff]  }
  0xd8   :  { %1934 = vmatpush1.bf16.msra.mxu1 %v3322_v24  ;;  %v482_v0 = vrot.slane %v481_v36, 1  ;;  %v447_v9 = vadd.f32 %v446_v18, %v445_v31  ;;  %v577_v47 = vsel %vm546_vm4, %v411_v8, %v576_v50  ;;  %v3385_v32 = vld [vmem:[#allocation6 + $0x2e8] ss:$16 sps:$4 sm:$0xff]   ;;  %v3393_v49 = vld [vmem:[#allocation6 + $0x2cc] ss:$16 sps:$4 sm:$0xff]  }
  0xd9   :  { %1935 = vmatprep.subr.bf16.mxu1 %v3330_v27  ;;  %1901 = vmatpush2.bf16.msra.mxu0 %v3343_v29  ;;  %v3370_v25 = vld [vmem:[#allocation6 + $0x148] ss:$16 sps:$4 sm:$0xff]   ;;  %v3378_v30 = vld [vmem:[#allocation6 + $0x12c] ss:$16 sps:$4 sm:$0xff]  }
  0xda   :  { %1902 = vmatprep.subr.bf16.mxu0 %v3351_v6  ;;  %v483_v60 = vadd.f32 %v482_v0, %v481_v36  ;;  %v578_v11 = vsel %vm548_vm5, %v447_v9, %v577_v47  ;;  %v3391_v27 = vld [vmem:[#allocation6 + $0x2c8] ss:$16 sps:$4 sm:$0xff]   ;;  %v3399_v5 = vld [vmem:[#allocation6 + $0x2ac] ss:$16 sps:$4 sm:$0xff]  }
  0xdb   :  { %v3376_v29 = vld [vmem:[#allocation6 + $0x128] ss:$16 sps:$4 sm:$0xff]   ;;  %v3384_v23 = vld [vmem:[#allocation6 + $0x10c] ss:$16 sps:$4 sm:$0xff]  }
  0xdc   :  { %1936 = vmatpush1.bf16.msra.mxu1 %v3328_v41  ;;  %v579_v17 = vsel %vm550_vm6, %v483_v60, %v578_v11  ;;  %v3397_v28 = vld [vmem:[#allocation6 + $0x2a8] ss:$16 sps:$4 sm:$0xff]   ;;  %v3405_v6 = vld [vmem:[#allocation6 + $0x28c] ss:$16 sps:$4 sm:$0xff]  }
  0xdd   :  { %1937 = vmatprep.subr.bf16.mxu1 %v3336_v43  ;;  %1903 = vmatpush2.bf16.msra.mxu0 %v3349_v3  ;;  %v618_v20 = vmul.f32 0.125, %v579_v17  ;;  %v3382_v16 = vld [vmem:[#allocation6 + $0x108] ss:$16 sps:$4 sm:$0xff]   ;;  %v3390_v13 = vld [vmem:[#allocation6 + $0x4ec] ss:$16 sps:$4 sm:$0xff]  }
  0xde   :  { %1904 = vmatprep.subr.bf16.mxu0 %v3357_v62  ;;  %v3403_v41 = vld [vmem:[#allocation6 + $0x288] ss:$16 sps:$4 sm:$0xff]   ;;  %v3411_v44 = vld [vmem:[#allocation6 + $0x26c] ss:$16 sps:$4 sm:$0xff]  }
  0xdf   :  { %v4082_v24 = vpack.c.bf16 %v618_v20, %v618_v20  ;;  %v3388_v42 = vld [vmem:[#allocation6 + $0x4e8] ss:$16 sps:$4 sm:$0xff]   ;;  %v3396_v43 = vld [vmem:[#allocation6 + $0x4cc] ss:$16 sps:$4 sm:$0xff]  }
  0xe0   :  { %1938 = vmatpush1.bf16.msra.mxu1 %v3334_v61  ;;  %v3417_v33 = vld [vmem:[#allocation6 + $0x24c] ss:$16 sps:$4 sm:$0xff]   ;;  %v3394_v61 = vld [vmem:[#allocation6 + $0x4c8] ss:$16 sps:$4 sm:$0xff]  }
  0xe1   :  { %1939 = vmatprep.subr.bf16.mxu1 %v3342_v48  ;;  %1905 = vmatpush2.bf16.msra.mxu0 %v3355_v34  ;;  %v3402_v3 = vld [vmem:[#allocation6 + $0x4ac] ss:$16 sps:$4 sm:$0xff]   ;;  %v3415_v53 = vld [vmem:[#allocation6 + $0x248] ss:$16 sps:$4 sm:$0xff]  }
  0xe2   :  { %1906 = vmatprep.subr.bf16.mxu0 %v3363_v12  ;;  %v3423_v58 = vld [vmem:[#allocation6 + $0x22c] ss:$16 sps:$4 sm:$0xff]   ;;  %v3400_v62 = vld [vmem:[#allocation6 + $0x4a8] ss:$16 sps:$4 sm:$0xff]  }
  0xe3   :  { %v3408_v31 = vld [vmem:[#allocation6 + $0x48c] ss:$16 sps:$4 sm:$0xff]   ;;  %v3421_v37 = vld [vmem:[#allocation6 + $0x228] ss:$16 sps:$4 sm:$0xff]  }
  0xe4   :  { %1940 = vmatpush2.bf16.msra.mxu1 %v3340_v40  ;;  %v3406_v48 = vld [vmem:[#allocation6 + $0x488] ss:$16 sps:$4 sm:$0xff]   ;;  %v3414_v34 = vld [vmem:[#allocation6 + $0x46c] ss:$16 sps:$4 sm:$0xff]  }
  0xe5   :  { %1941 = vmatprep.subr.bf16.mxu1 %v3348_v52  ;;  %1907 = vmatpush2.bf16.msra.mxu0 %v3361_v63  ;;  %v3435_v38 = vld [vmem:[#allocation6 + $0x3ec] ss:$16 sps:$4 sm:$0xff]   ;;  %v3412_v12 = vld [vmem:[#allocation6 + $0x468] ss:$16 sps:$4 sm:$0xff]  }
  0xe6   :  { %1908 = vmatprep.subr.bf16.mxu0 %v3369_v39  ;;  %v3420_v57 = vld [vmem:[#allocation6 + $0x44c] ss:$16 sps:$4 sm:$0xff]   ;;  %v3433_v40 = vld [vmem:[#allocation6 + $0x3e8] ss:$16 sps:$4 sm:$0xff]  }
  0xe7   :  { %v3441_v36 = vld [vmem:[#allocation6 + $0x3cc] ss:$16 sps:$4 sm:$0xff]   ;;  %v3418_v46 = vld [vmem:[#allocation6 + $0x448] ss:$16 sps:$4 sm:$0xff]  }
  0xe8   :  { %1942 = vmatpush2.bf16.msra.mxu1 %v3346_v51  ;;  %v3426_v52 = vld [vmem:[#allocation6 + $0x42c] ss:$16 sps:$4 sm:$0xff]   ;;  %v3439_v18 = vld [vmem:[#allocation6 + $0x3c8] ss:$16 sps:$4 sm:$0xff]  }
  0xe9   :  { %1943 = vmatprep.subr.bf16.mxu1 %v3354_v10  ;;  %1909 = vmatpush2.bf16.msra.mxu0 %v3367_v45  ;;  %v3447_v63 = vld [vmem:[#allocation6 + $0x3ac] ss:$16 sps:$4 sm:$0xff]   ;;  %v3424_v8 = vld [vmem:[#allocation6 + $0x428] ss:$16 sps:$4 sm:$0xff]  }
  0xea   :  { %1910 = vmatprep.subr.bf16.mxu0 %v3375_v54  ;;  %v3432_v39 = vld [vmem:[#allocation6 + $0x40c] ss:$16 sps:$4 sm:$0xff]   ;;  %v3445_v50 = vld [vmem:[#allocation6 + $0x3a8] ss:$16 sps:$4 sm:$0xff]  }
  0xeb   :  { %v3453_v51 = vld [vmem:[#allocation6 + $0x38c] ss:$16 sps:$4 sm:$0xff]   ;;  %v3430_v0 = vld [vmem:[#allocation6 + $0x408] ss:$16 sps:$4 sm:$0xff]  }
  0xec   :  { %1944 = vmatpush2.bf16.msra.mxu1 %v3352_v2  ;;  %v3438_v10 = vld [vmem:[#allocation6 + $0x5ec] ss:$16 sps:$4 sm:$0xff]   ;;  %v3451_v9 = vld [vmem:[#allocation6 + $0x388] ss:$16 sps:$4 sm:$0xff]  }
  0xed   :  { %1945 = vmatprep.subr.bf16.mxu1 %v3360_v35  ;;  %1911 = vmatpush2.bf16.msra.mxu0 %v3373_v14  ;;  %v3459_v45 = vld [vmem:[#allocation6 + $0x36c] ss:$16 sps:$4 sm:$0xff]   ;;  %v3436_v47 = vld [vmem:[#allocation6 + $0x5e8] ss:$16 sps:$4 sm:$0xff]  }
  0xee   :  { %1912 = vmatprep.subr.bf16.mxu0 %v3381_v26  ;;  %v3444_v54 = vld [vmem:[#allocation6 + $0x5cc] ss:$16 sps:$4 sm:$0xff]   ;;  %v3457_v2 = vld [vmem:[#allocation6 + $0x368] ss:$16 sps:$4 sm:$0xff]  }
  0xef   :  { %v3465_v60 = vld [vmem:[#allocation6 + $0x34c] ss:$16 sps:$4 sm:$0xff]   ;;  %v3442_v35 = vld [vmem:[#allocation6 + $0x5c8] ss:$16 sps:$4 sm:$0xff]  }
  0xf0   :  { %1946 = vmatpush2.bf16.msra.mxu1 %v3358_v1  ;;  %v3450_v11 = vld [vmem:[#allocation6 + $0x5ac] ss:$16 sps:$4 sm:$0xff]   ;;  %v3463_v14 = vld [vmem:[#allocation6 + $0x348] ss:$16 sps:$4 sm:$0xff]  }
  0xf1   :  { %1947 = vmatprep.subr.bf16.mxu1 %v3366_v22  ;;  %1913 = vmatpush2.bf16.msra.mxu0 %v3379_v19  ;;  %v3471_v26 = vld [vmem:[#allocation6 + $0x32c] ss:$16 sps:$4 sm:$0xff]   ;;  %v3448_v1 = vld [vmem:[#allocation6 + $0x5a8] ss:$16 sps:$4 sm:$0xff]  }
  0xf2   :  { %1964 = vmatprep.subr.bf16.mxu0 %v3387_v21  ;;  %v3456_v17 = vld [vmem:[#allocation6 + $0x58c] ss:$16 sps:$4 sm:$0xff]   ;;  %v3469_v22 = vld [vmem:[#allocation6 + $0x328] ss:$16 sps:$4 sm:$0xff]  }
  0xf3   :  { %v3477_v19 = vld [vmem:[#allocation6 + $0x30c] ss:$16 sps:$4 sm:$0xff]   ;;  %v3454_v20 = vld [vmem:[#allocation6 + $0x588] ss:$16 sps:$4 sm:$0xff]  }
  0xf4   :  { %1948 = vmatpush2.bf16.msra.mxu1 %v3364_v55  ;;  %1915 = vmatmul.mubr.bf16.vlgmr.msra.gmra.mxu0 %v4082_v24  ;;  %v3462_v21 = vld [vmem:[#allocation6 + $0x56c] ss:$16 sps:$4 sm:$0xff]   ;;  %v3475_v55 = vld [vmem:[#allocation6 + $0x308] ss:$16 sps:$4 sm:$0xff]  }
  0xf5   :  { %1949 = vmatprep.subr.bf16.mxu1 %v3372_v4  ;;  %1965 = vmatpush1.bf16.msra.mxu0 %v3385_v32  ;;  %v3483_v4 = vld [vmem:[#allocation9 + $0x74] ss:$8 sps:$4 sm:$0xff]  }
  0xf6   :  { %1996 = vmatprep.mubr.bf16.mxu0 %v3943_v15  ;;  %1966 = vmatprep.subr.bf16.mxu0 %v3393_v49  ;;  %v3409_v15 = vld [vmem:[#allocation6 + $0x268] ss:$16 sps:$4 sm:$0xff]   ;;  %v3468_v49 = vld [vmem:[#allocation6 + $0x54c] ss:$16 sps:$4 sm:$0xff]  }
  0xf7   :  { %v3460_v32 = vld [vmem:[#allocation6 + $0x568] ss:$16 sps:$4 sm:$0xff]  }
  0xf8   :  { %1950 = vmatpush2.bf16.msra.mxu1 %v3370_v25  ;;  %v3481_v25 = vld [vmem:[#allocation9 + $0x70] ss:$8 sps:$4 sm:$0xff]  }
  0xf9   :  { %1951 = vmatprep.subr.bf16.mxu1 %v3378_v30  ;;  %1967 = vmatpush1.bf16.msra.mxu0 %v3391_v27  ;;  %v3486_v30 = vld [vmem:[#allocation9 + $0x64] ss:$8 sps:$4 sm:$0xff]  }
  0xfa   :  { %1968 = vmatprep.subr.bf16.mxu0 %v3399_v5  ;;  %v3466_v27 = vld [vmem:[#allocation6 + $0x548] ss:$16 sps:$4 sm:$0xff]   ;;  %v3474_v5 = vld [vmem:[#allocation6 + $0x52c] ss:$16 sps:$4 sm:$0xff]  }
  0xfc   :  { %1952 = vmatpush2.bf16.msra.mxu1 %v3376_v29  ;;  %v3484_v29 = vld [vmem:[#allocation9 + $0x60] ss:$8 sps:$4 sm:$0xff]  }
  0xfd   :  { %1953 = vmatprep.subr.bf16.mxu1 %v3384_v23  ;;  %1969 = vmatpush1.bf16.msra.mxu0 %v3397_v28  ;;  %v3489_v23 = vld [vmem:[#allocation9 + $0x54] ss:$8 sps:$4 sm:$0xff]  }
  0xfe   :  { %1970 = vmatprep.subr.bf16.mxu0 %v3405_v6  ;;  %v3472_v28 = vld [vmem:[#allocation6 + $0x528] ss:$16 sps:$4 sm:$0xff]   ;;  %v3480_v6 = vld [vmem:[#allocation6 + $0x50c] ss:$16 sps:$4 sm:$0xff]  }
 0x100   :  { %1954 = vmatpush2.bf16.msra.mxu1 %v3382_v16  ;;  %v3487_v16 = vld [vmem:[#allocation9 + $0x50] ss:$8 sps:$4 sm:$0xff]  }
 0x101   :  { %2005 = vmatprep.subr.bf16.mxu1 %v3390_v13  ;;  %1971 = vmatpush1.bf16.msra.mxu0 %v3403_v41  ;;  %v3492_v13 = vld [vmem:[#allocation9 + $0x44] ss:$8 sps:$4 sm:$0xff]  }
 0x102   :  { %1972 = vmatprep.subr.bf16.mxu0 %v3411_v44  ;;  %v3478_v41 = vld [vmem:[#allocation6 + $0x508] ss:$16 sps:$4 sm:$0xff]   ;;  %v3490_v44 = vld [vmem:[#allocation9 + $0x40] ss:$8 sps:$4 sm:$0xff]  }
 0x103   :  { %1956 = vmatmul.mubr.bf16.vlgmr.msra.gmra.mxu1 %v3992_v56  ;;  %v3429_v56 = vld [vmem:[#allocation6 + $0x20c] ss:$16 sps:$4 sm:$0xff]  }
 0x104   :  { %2006 = vmatpush1.bf16.msra.mxu1 %v3388_v42  ;;  %2037 = vmatprep.mubr.bf16.mxu1 %v4070_v59  ;;  %v3427_v59 = vld [vmem:[#allocation6 + $0x208] ss:$16 sps:$4 sm:$0xff]  }
 0x105   :  { %2007 = vmatprep.subr.bf16.mxu1 %v3396_v43  ;;  %1973 = vmatpush1.bf16.msra.mxu0 %v3409_v15  ;;  %v3495_v42 = vld [vmem:[#allocation9 + $0x34] ss:$8 sps:$4 sm:$0xff]   ;;  %v3498_v43 = vld [vmem:[#allocation9 + $0x24] ss:$8 sps:$4 sm:$0xff]   ;;  %v3496_v15 = vld [vmem:[#allocation9 + $0x20] ss:$8 sps:$4 sm:$0xff]  }
 0x106   :  { %1974 = vmatprep.subr.bf16.mxu0 %v3417_v33  ;;  %v3501_v33 = vld [vmem:[#allocation9 + $0x14] ss:$8 sps:$4 sm:$0xff]  }
 0x108   :  { %2008 = vmatpush1.bf16.msra.mxu1 %v3394_v61  ;;  %v3529_v61 = vld [vmem:[#allocation9 + $0x170] ss:$8 sps:$4 sm:$0xff]  }
 0x109   :  { %2009 = vmatprep.subr.bf16.mxu1 %v3402_v3  ;;  %1975 = vmatpush1.bf16.msra.mxu0 %v3415_v53  ;;  %v3531_v3 = vld [vmem:[#allocation9 + $0x174] ss:$8 sps:$4 sm:$0xff]   ;;  %v3499_v53 = vld [vmem:[#allocation9 + $0x10] ss:$8 sps:$4 sm:$0xff]  }
 0x10a   :  { %1976 = vmatprep.subr.bf16.mxu0 %v3423_v58  ;;  %v3534_v58 = vld [vmem:[#allocation9 + $0x164] ss:$8 sps:$4 sm:$0xff]  }
 0x10c   :  { %2010 = vmatpush1.bf16.msra.mxu1 %v3400_v62  ;;  %v3504_v62 = vld [vmem:[#allocation9 + $0x4] ss:$8 sps:$4 sm:$0xff]  }
 0x10d   :  { %2011 = vmatprep.subr.bf16.mxu1 %v3408_v31  ;;  %1977 = vmatpush1.bf16.msra.mxu0 %v3421_v37  ;;  %v3532_v31 = vld [vmem:[#allocation9 + $0x160] ss:$8 sps:$4 sm:$0xff]   ;;  %v3537_v37 = vld [vmem:[#allocation9 + $0x154] ss:$8 sps:$4 sm:$0xff]  }
 0x10e   :  { %1978 = vmatprep.subr.bf16.mxu0 %v3429_v56  ;;  %v3507_v56 = vld [vmem:[#allocation9 + $0xf4] ss:$8 sps:$4 sm:$0xff]  }
 0x110   :  { %2012 = vmatpush1.bf16.msra.mxu1 %v3406_v48  ;;  %v3535_v48 = vld [vmem:[#allocation9 + $0x150] ss:$8 sps:$4 sm:$0xff]  }
 0x111   :  { %2013 = vmatprep.subr.bf16.mxu1 %v3414_v34  ;;  %1979 = vmatpush1.bf16.msra.mxu0 %v3427_v59  ;;  %v3540_v34 = vld [vmem:[#allocation9 + $0x144] ss:$8 sps:$4 sm:$0xff]   ;;  %v3505_v59 = vld [vmem:[#allocation9 + $0xf0] ss:$8 sps:$4 sm:$0xff]  }
 0x112   :  { %1980 = vmatprep.subr.bf16.mxu0 %v3435_v38  ;;  %v3510_v38 = vld [vmem:[#allocation9 + $0xe4] ss:$8 sps:$4 sm:$0xff]  }
 0x114   :  { %2014 = vmatpush1.bf16.msra.mxu1 %v3412_v12  ;;  %v3538_v12 = vld [vmem:[#allocation9 + $0x140] ss:$8 sps:$4 sm:$0xff]  }
 0x115   :  { %2015 = vmatprep.subr.bf16.mxu1 %v3420_v57  ;;  %1981 = vmatpush2.bf16.msra.mxu0 %v3433_v40  ;;  %v3543_v57 = vld [vmem:[#allocation9 + $0x134] ss:$8 sps:$4 sm:$0xff]   ;;  %v3508_v40 = vld [vmem:[#allocation9 + $0xe0] ss:$8 sps:$4 sm:$0xff]  }
 0x116   :  { %1982 = vmatprep.subr.bf16.mxu0 %v3441_v36  ;;  %v3513_v36 = vld [vmem:[#allocation9 + $0xd4] ss:$8 sps:$4 sm:$0xff]  }
 0x118   :  { %2016 = vmatpush1.bf16.msra.mxu1 %v3418_v46  ;;  %v3541_v46 = vld [vmem:[#allocation9 + $0x130] ss:$8 sps:$4 sm:$0xff]  }
 0x119   :  { %2017 = vmatprep.subr.bf16.mxu1 %v3426_v52  ;;  %1983 = vmatpush2.bf16.msra.mxu0 %v3439_v18  ;;  %v3546_v52 = vld [vmem:[#allocation9 + $0x124] ss:$8 sps:$4 sm:$0xff]   ;;  %v3511_v18 = vld [vmem:[#allocation9 + $0xd0] ss:$8 sps:$4 sm:$0xff]  }
 0x11a   :  { %1984 = vmatprep.subr.bf16.mxu0 %v3447_v63  ;;  %v3516_v63 = vld [vmem:[#allocation9 + $0xc4] ss:$8 sps:$4 sm:$0xff]  }
 0x11c   :  { %2018 = vmatpush1.bf16.msra.mxu1 %v3424_v8  ;;  %v3544_v8 = vld [vmem:[#allocation9 + $0x120] ss:$8 sps:$4 sm:$0xff]  }
 0x11d   :  { %2019 = vmatprep.subr.bf16.mxu1 %v3432_v39  ;;  %1985 = vmatpush2.bf16.msra.mxu0 %v3445_v50  ;;  %v3549_v39 = vld [vmem:[#allocation9 + $0x114] ss:$8 sps:$4 sm:$0xff]   ;;  %v3514_v50 = vld [vmem:[#allocation9 + $0xc0] ss:$8 sps:$4 sm:$0xff]  }
 0x11e   :  { %1986 = vmatprep.subr.bf16.mxu0 %v3453_v51  ;;  %v3519_v51 = vld [vmem:[#allocation9 + $0xb4] ss:$8 sps:$4 sm:$0xff]  }
 0x120   :  { %2020 = vmatpush1.bf16.msra.mxu1 %v3430_v0  ;;  %v3547_v0 = vld [vmem:[#allocation9 + $0x110] ss:$8 sps:$4 sm:$0xff]  }
 0x121   :  { %2021 = vmatprep.subr.bf16.mxu1 %v3438_v10  ;;  %1987 = vmatpush2.bf16.msra.mxu0 %v3451_v9  ;;  %v3552_v10 = vld [vmem:[#allocation9 + $0x104] ss:$8 sps:$4 sm:$0xff]   ;;  %v3517_v9 = vld [vmem:[#allocation9 + $0xb0] ss:$8 sps:$4 sm:$0xff]  }
 0x122   :  { %1988 = vmatprep.subr.bf16.mxu0 %v3459_v45  ;;  %v3522_v45 = vld [vmem:[#allocation9 + $0xa4] ss:$8 sps:$4 sm:$0xff]  }
 0x124   :  { %2022 = vmatpush2.bf16.msra.mxu1 %v3436_v47  ;;  %v3550_v47 = vld [vmem:[#allocation9 + $0x100] ss:$8 sps:$4 sm:$0xff]  }
 0x125   :  { %2023 = vmatprep.subr.bf16.mxu1 %v3444_v54  ;;  %1989 = vmatpush2.bf16.msra.mxu0 %v3457_v2  ;;  %v3555_v54 = vld [vmem:[#allocation9 + $0x1f4] ss:$8 sps:$4 sm:$0xff]   ;;  %v3520_v2 = vld [vmem:[#allocation9 + $0xa0] ss:$8 sps:$4 sm:$0xff]  }
 0x126   :  { %1990 = vmatprep.subr.bf16.mxu0 %v3465_v60  ;;  %v3525_v60 = vld [vmem:[#allocation9 + $0x94] ss:$8 sps:$4 sm:$0xff]  }
 0x128   :  { %2024 = vmatpush2.bf16.msra.mxu1 %v3442_v35  ;;  %v3553_v35 = vld [vmem:[#allocation9 + $0x1f0] ss:$8 sps:$4 sm:$0xff]  }
 0x129   :  { %2025 = vmatprep.subr.bf16.mxu1 %v3450_v11  ;;  %1991 = vmatpush2.bf16.msra.mxu0 %v3463_v14  ;;  %v3558_v11 = vld [vmem:[#allocation9 + $0x1e4] ss:$8 sps:$4 sm:$0xff]   ;;  %v3523_v14 = vld [vmem:[#allocation9 + $0x90] ss:$8 sps:$4 sm:$0xff]  }
 0x12a   :  { %1992 = vmatprep.subr.bf16.mxu0 %v3471_v26  ;;  %v3528_v26 = vld [vmem:[#allocation9 + $0x84] ss:$8 sps:$4 sm:$0xff]  }
 0x12c   :  { %2026 = vmatpush2.bf16.msra.mxu1 %v3448_v1  ;;  %v3556_v1 = vld [vmem:[#allocation9 + $0x1e0] ss:$8 sps:$4 sm:$0xff]  }
 0x12d   :  { %2027 = vmatprep.subr.bf16.mxu1 %v3456_v17  ;;  %1993 = vmatpush2.bf16.msra.mxu0 %v3469_v22  ;;  %v3561_v17 = vld [vmem:[#allocation9 + $0x1d4] ss:$8 sps:$4 sm:$0xff]   ;;  %v3526_v22 = vld [vmem:[#allocation9 + $0x80] ss:$8 sps:$4 sm:$0xff]  }
 0x12e   :  { %1994 = vmatprep.subr.bf16.mxu0 %v3477_v19  ;;  %v3559_v19 = vld [vmem:[#allocation9 + $0x1d0] ss:$8 sps:$4 sm:$0xff]  }
 0x130   :  { %2028 = vmatpush2.bf16.msra.mxu1 %v3454_v20  ;;  %v3564_v20 = vld [vmem:[#allocation9 + $0x1c4] ss:$8 sps:$4 sm:$0xff]  }
 0x131   :  { %2029 = vmatprep.subr.bf16.mxu1 %v3462_v21  ;;  %1995 = vmatpush2.bf16.msra.mxu0 %v3475_v55  ;;  %v3562_v21 = vld [vmem:[#allocation9 + $0x1c0] ss:$8 sps:$4 sm:$0xff]  }
 0x132   :  { %2450 = vmatprep.subr.bf16.mxu0 %v3483_v4  ;;  %v3567_v4 = vld [vmem:[#allocation9 + $0x1b4] ss:$8 sps:$4 sm:$0xff]  }
 0x134   :  { %2030 = vmatpush2.bf16.msra.mxu1 %v3460_v32  ;;  %1997 = vmatmul.mubr.bf16.vlgmr.msra.gmra.mxu0 %v4032_v7  ;;  %v3493_v7 = vld [vmem:[#allocation9 + $0x30] ss:$8 sps:$4 sm:$0xff]  }
 0x135   :  { %2031 = vmatprep.subr.bf16.mxu1 %v3468_v49  ;;  %2451 = vmatpush1.bf16.msra.mxu0 %v3481_v25  ;;  %v3565_v49 = vld [vmem:[#allocation9 + $0x1b0] ss:$8 sps:$4 sm:$0xff]  }
 0x136   :  { %2452 = vmatprep.subr.bf16.mxu0 %v3486_v30 }
 0x138   :  { %2032 = vmatpush2.bf16.msra.mxu1 %v3466_v27  ;;  %v3570_v27 = vld [vmem:[#allocation9 + $0x1a4] ss:$8 sps:$4 sm:$0xff]  }
 0x139   :  { %2033 = vmatprep.subr.bf16.mxu1 %v3474_v5  ;;  %2453 = vmatpush1.bf16.msra.mxu0 %v3484_v29  ;;  %v3568_v5 = vld [vmem:[#allocation9 + $0x1a0] ss:$8 sps:$4 sm:$0xff]  }
 0x13a   :  { %2454 = vmatprep.subr.bf16.mxu0 %v3489_v23 }
 0x13c   :  { %2034 = vmatpush2.bf16.msra.mxu1 %v3472_v28  ;;  %v3573_v28 = vld [vmem:[#allocation9 + $0x194] ss:$8 sps:$4 sm:$0xff]  }
 0x13d   :  { %2035 = vmatprep.subr.bf16.mxu1 %v3480_v6  ;;  %2455 = vmatpush1.bf16.msra.mxu0 %v3487_v16  ;;  %v3571_v6 = vld [vmem:[#allocation9 + $0x190] ss:$8 sps:$4 sm:$0xff]  }
 0x13e   :  { %2456 = vmatprep.subr.bf16.mxu0 %v3492_v13 }
 0x140   :  { %2036 = vmatpush2.bf16.msra.mxu1 %v3478_v41  ;;  %v3576_v41 = vld [vmem:[#allocation9 + $0x184] ss:$8 sps:$4 sm:$0xff]  }
 0x141   :  { %2457 = vmatpush1.bf16.msra.mxu0 %v3490_v44  ;;  %2491 = vmatprep.subr.bf16.mxu1 %v3531_v3  ;;  %v3574_v44 = vld [vmem:[#allocation9 + $0x180] ss:$8 sps:$4 sm:$0xff]  }
 0x142   :  { %2458 = vmatprep.subr.bf16.mxu0 %v3495_v42  ;;  %v820_v42 = vlaneseq }
 0x143   :  { %2038 = vmatmul.mubr.bf16.vlgmr.msra.gmra.mxu1 %v4082_v24  ;;  %v3502_v24 = vld [vmem:[#allocation9] ss:$8 sps:$4 sm:$0xff]  }
 0x144   :  { %2492 = vmatpush1.bf16.msra.mxu1 %v3529_v61 }
 0x145   :  { %2459 = vmatpush1.bf16.msra.mxu0 %v3493_v7  ;;  %2493 = vmatprep.subr.bf16.mxu1 %v3534_v58  ;;  %v4090_v7 = vshrl.u32 %v820_v42, 7  ;;  %v3765_v42 = vmov 0.0  }
 0x146   :  { %2460 = vmatprep.subr.bf16.mxu0 %v3498_v43 }
 0x147   :  { %v822_v43 = vsub.s32 0, %v4090_v7 }
 0x148   :  { %2494 = vmatpush1.bf16.msra.mxu1 %v3532_v31 }
 0x149   :  { %2461 = vmatpush1.bf16.msra.mxu0 %v3496_v15  ;;  %2495 = vmatprep.subr.bf16.mxu1 %v3537_v37  ;;  %v818_v15 = vld [vmem:[#allocation8] sm:$0xf] }
 0x14a   :  { %2462 = vmatprep.subr.bf16.mxu0 %v3501_v33  ;;  %v826_v33 = vsub.s32 1, %v4090_v7  ;;  %v823_v61 = vrot.slane %v818_v15, %v822_v43 }
 0x14c   :  { %2496 = vmatpush1.bf16.msra.mxu1 %v3535_v48  ;;  %v827_v3 = vrot.slane %v818_v15, %v826_v33 }
 0x14d   :  { %2463 = vmatpush1.bf16.msra.mxu0 %v3499_v53  ;;  %2497 = vmatprep.subr.bf16.mxu1 %v3540_v34 }
 0x14e   :  { %2464 = vmatprep.subr.bf16.mxu0 %v3504_v62 }
 0x150   :  { %2498 = vmatpush1.bf16.msra.mxu1 %v3538_v12 }
 0x151   :  { %2465 = vmatpush1.bf16.msra.mxu0 %v3502_v24  ;;  %2499 = vmatprep.subr.bf16.mxu1 %v3543_v57 }
 0x152   :  { %2466 = vmatprep.subr.bf16.mxu0 %v3507_v56 }
 0x154   :  { %2500 = vmatpush1.bf16.msra.mxu1 %v3541_v46 }
 0x155   :  { %2467 = vmatpush2.bf16.msra.mxu0 %v3505_v59  ;;  %2501 = vmatprep.subr.bf16.mxu1 %v3546_v52 }
 0x156   :  { %2468 = vmatprep.subr.bf16.mxu0 %v3510_v38 }
 0x158   :  { %2502 = vmatpush1.bf16.msra.mxu1 %v3544_v8  ;;  %v830_v8 = vsub.s32 2, %v4090_v7 }
 0x159   :  { %2469 = vmatpush2.bf16.msra.mxu0 %v3508_v40  ;;  %2503 = vmatprep.subr.bf16.mxu1 %v3549_v39 }
 0x15a   :  { %2470 = vmatprep.subr.bf16.mxu0 %v3513_v36 }
 0x15c   :  { %2504 = vmatpush1.bf16.msra.mxu1 %v3547_v0  ;;  %v831_v0 = vrot.slane %v818_v15, %v830_v8 }
 0x15d   :  { %2471 = vmatpush2.bf16.msra.mxu0 %v3511_v18  ;;  %2505 = vmatprep.subr.bf16.mxu1 %v3552_v10 }
 0x15e   :  { %2472 = vmatprep.subr.bf16.mxu0 %v3516_v63 }
 0x160   :  { %2506 = vmatpush1.bf16.msra.mxu1 %v3550_v47 }
 0x161   :  { %2473 = vmatpush2.bf16.msra.mxu0 %v3514_v50  ;;  %2507 = vmatprep.subr.bf16.mxu1 %v3555_v54  ;;  %v834_v50 = vsub.s32 3, %v4090_v7  ;;  %v3600_v7 = vld [vmem:[#allocation12] sm:$0xff]  }
 0x162   :  { %2474 = vmatprep.subr.bf16.mxu0 %v3519_v51 }
 0x164   :  { %2508 = vmatpush2.bf16.msra.mxu1 %v3553_v35 }
 0x165   :  { %2475 = vmatpush2.bf16.msra.mxu0 %v3517_v9  ;;  %2509 = vmatprep.subr.bf16.mxu1 %v3558_v11  ;;  %v835_v9 = vrot.slane %v818_v15, %v834_v50  ;;  %v3594_v15 = vld [vmem:[#allocation12 + $0x30] sm:$0xff]   ;;  %v3099_v50 = vld [vmem:[%s4122_s6] ss:$0 sm:$0xff]  ;;  %s3721_s6 = scalar_lea.vmem %s2832_s25, 128 }
 0x166   :  { %2476 = vmatprep.subr.bf16.mxu0 %v3522_v45  ;;  %p3722_p2 = scmp.ne.s32.totalorder %s2832_s25, %s3721_s6  ;;  %p3727_p4 = scmp.lt.s32.totalorder %s3721_s6, %s3721_s6 }
 0x168   :  { %2510 = vmatpush2.bf16.msra.mxu1 %v3556_v1  ;;  %v3579_v1 = vld [vmem:[#allocation11 + $0x70] sm:$0xff]   ;;  %p3728_p5 = por %p3727_p4, %p3726_p3 }
 0x169   :  { %2477 = vmatpush2.bf16.msra.mxu0 %v3520_v2  ;;  %2511 = vmatprep.subr.bf16.mxu1 %v3561_v17 }
 0x16a   :  { %2478 = vmatprep.subr.bf16.mxu0 %v3525_v60  ;;  %p3729_p6 = pnand %p3728_p5, %p3722_p2 }
 0x16c   :  { %2512 = vmatpush2.bf16.msra.mxu1 %v3559_v19 }
 0x16d   :  { %2479 = vmatpush2.bf16.msra.mxu0 %v3523_v14  ;;  %2513 = vmatprep.subr.bf16.mxu1 %v3564_v20  ;;  %v3577_v14 = vld [vmem:[#allocation11 + $0x78] sm:$0xff]  }
 0x16e   :  { %2480 = vmatprep.subr.bf16.mxu0 %v3528_v26  ;;  %v3578_v26 = vld [vmem:[#allocation11 + $0x38] sm:$0xff]  }
 0x170   :  { %2514 = vmatpush2.bf16.msra.mxu1 %v3562_v21  ;;  %v3580_v21 = vld [vmem:[#allocation11 + $0x30] sm:$0xff]  }
 0x171   :  { %2481 = vmatpush2.bf16.msra.mxu0 %v3526_v22  ;;  %2515 = vmatprep.subr.bf16.mxu1 %v3567_v4  ;;  %v3581_v4 = vld [vmem:[#allocation11 + $0x68] sm:$0xff]  }
 0x172   :  { %3125 = vmatprep.subr.bf16.mxu0 %v3577_v14 }
 0x173   :  { %v1834_v55 = vpop.f32.mrf.mxu0 }
 0x174   :  { %2516 = vmatpush2.bf16.msra.mxu1 %v3565_v49  ;;  %v1835_v53 = vadd.f32 %v1834_v55, %v823_v61  ;;  %v3595_v61 = vld [vmem:[#allocation12 + $0x28] sm:$0xff]  }
 0x175   :  { %v1836_v32 = vpop.f32.mrf.mxu0  ;;  %2517 = vmatprep.subr.bf16.mxu1 %v3570_v27  ;;  %v3584_v27 = vld [vmem:[#allocation11 + $0x20] sm:$0xff]  }
 0x176   :  { %v1837_v58 = vadd.f32 %v1836_v32, %v827_v3  ;;  %v3596_v3 = vld [vmem:[#allocation12 + $0x20] sm:$0xff]  }
 0x177   :  { %v1838_v25 = vpop.f32.mrf.mxu0 }
 0x178   :  { %2518 = vmatpush2.bf16.msra.mxu1 %v3568_v5  ;;  %v3582_v25 = vld [vmem:[#allocation11 + $0x28] sm:$0xff]   ;;  %v3585_v5 = vld [vmem:[#allocation11 + $0x58] sm:$0xff]  }
 0x179   :  { %v1839_v30 = vpop.f32.mrf.mxu0  ;;  %2519 = vmatprep.subr.bf16.mxu1 %v3573_v28  ;;  %v3588_v28 = vld [vmem:[#allocation11 + $0x10] sm:$0xff]  }
 0x17a   :  { %v3583_v30 = vld [vmem:[#allocation11 + $0x60] sm:$0xff]  }
 0x17c   :  { %2520 = vmatpush2.bf16.msra.mxu1 %v3571_v6  ;;  %v3589_v6 = vld [vmem:[#allocation11 + $0x48] sm:$0xff]  }
 0x17d   :  { %2521 = vmatprep.subr.bf16.mxu1 %v3576_v41  ;;  %v3592_v41 = vld [vmem:[#allocation11] sm:$0xff]  }
 0x180   :  { %2522 = vmatpush2.bf16.msra.mxu1 %v3574_v44  ;;  %v3593_v44 = vld [vmem:[#allocation12 + $0x38] sm:$0xff]  }
 0x181   :  { %3156 = vmatprep.subr.bf16.mxu1 %v3765_v42 }
 0x183   :  { %v1875_v29 = vpop.f32.mrf.mxu1 }
 0x184   :  { %v1876_v62 = vadd.f32 %v1875_v29, %v1835_v53  ;;  %v3586_v29 = vld [vmem:[#allocation11 + $0x18] sm:$0xff]  }
 0x185   :  { %v1877_v23 = vpop.f32.mrf.mxu1  ;;  %v3597_v53 = vld [vmem:[#allocation12 + $0x18] sm:$0xff]  }
 0x186   :  { %v1878_v37 = vadd.f32 %v1877_v23, %v1837_v58  ;;  %v3587_v23 = vld [vmem:[#allocation11 + $0x50] sm:$0xff]  }
 0x187   :  { %v1879_v16 = vpop.f32.mrf.mxu1 }
 0x188   :  { %v3590_v16 = vld [vmem:[#allocation11 + $0x8] sm:$0xff]  }
 0x189   :  { %v1880_v13 = vpop.f32.mrf.mxu1 }
 0x18a   :  { %v3591_v13 = vld [vmem:[#allocation11 + $0x40] sm:$0xff]  }
 0x1b4   :  { %v1916_v31 = vpop.f32.mrf.mxu0 }
 0x1b5   :  { %v1917_v24 = vadd.f32 %v1916_v31, %v1876_v62 }
 0x1b6   :  { %v1918_v56 = vpop.f32.mrf.mxu0 }
 0x1b7   :  { %v1919_v48 = vadd.f32 %v1918_v56, %v1878_v37  ;;  %v2046_v34 = vmax.f32 %v1917_v24, 0.0  ;;  %v2118_v24 = vld [vmem:[%s4120_s4] sm:$0x3] }
 0x1b8   :  { %v1920_v59 = vpop.f32.mrf.mxu0  ;;  %v2123_v56 = vrot.slane %v2118_v24, %v822_v43  ;;  %v3599_v43 = vld [vmem:[#allocation12 + $0x8] sm:$0xff]  }
 0x1b9   :  { %v2047_v38 = vmax.f32 %v1919_v48, 0.0  ;;  %v2050_v40 = vpack.c.bf16 %v2046_v34, %v2046_v34  ;;  %v2127_v48 = vrot.slane %v2118_v24, %v826_v33 }
 0x1ba   :  { %v1921_v12 = vpop.f32.mrf.mxu0 }
 0x1bb   :  { %v2051_v57 = vpack.c.bf16 %v2047_v38, %v2047_v38 }
 0x1bd   :  { %2482 = vmatprep.mubr.bf16.mxu0 %v2051_v57 }
 0x1be   :  { %2483 = vmatmul.mubr.bf16.vlgmr.msra.gmra.mxu0 %v2050_v40 }
 0x1bf   :  { %3126 = vmatpush3.bf16.msra.mxu0 %v3578_v26 }
 0x1c0   :  { %3127 = vmatprep.subr.bf16.mxu0 %v3579_v1 }
 0x1c3   :  { %v1957_v36 = vpop.f32.mrf.mxu1  ;;  %3128 = vmatpush3.bf16.msra.mxu0 %v3580_v21 }
 0x1c4   :  { %v1958_v45 = vadd.f32 %v1957_v36, %v831_v0  ;;  %3129 = vmatprep.subr.bf16.mxu0 %v3581_v4 }
 0x1c5   :  { %v1959_v46 = vpop.f32.mrf.mxu1 }
 0x1c6   :  { %v1960_v47 = vadd.f32 %v1959_v46, %v835_v9 }
 0x1c7   :  { %v1961_v52 = vpop.f32.mrf.mxu1  ;;  %3130 = vmatpush3.bf16.msra.mxu0 %v3582_v25 }
 0x1c8   :  { %3131 = vmatprep.subr.bf16.mxu0 %v3583_v30 }
 0x1c9   :  { %v1962_v18 = vpop.f32.mrf.mxu1 }
 0x1cb   :  { %3132 = vmatpush3.bf16.msra.mxu0 %v3584_v27 }
 0x1cc   :  { %3133 = vmatprep.subr.bf16.mxu0 %v3585_v5 }
 0x1cf   :  { %3134 = vmatpush3.bf16.msra.mxu0 %v3586_v29 }
 0x1d0   :  { %3135 = vmatprep.subr.bf16.mxu0 %v3587_v23 }
 0x1d3   :  { %3136 = vmatpush3.bf16.msra.mxu0 %v3588_v28 }
 0x1d4   :  { %3137 = vmatprep.subr.bf16.mxu0 %v3589_v6 }
 0x1d7   :  { %3138 = vmatpush3.bf16.msra.mxu0 %v3590_v16 }
 0x1d8   :  { %3139 = vmatprep.subr.bf16.mxu0 %v3591_v13 }
 0x1db   :  { %3140 = vmatpush3.bf16.msra.mxu0 %v3592_v41 }
 0x1f4   :  { %v1998_v63 = vpop.f32.mrf.mxu0 }
 0x1f5   :  { %v1999_v54 = vadd.f32 %v1998_v63, %v1958_v45 }
 0x1f6   :  { %v2000_v39 = vpop.f32.mrf.mxu0 }
 0x1f7   :  { %v2001_v2 = vadd.f32 %v2000_v39, %v1960_v47  ;;  %v3598_v39 = vld [vmem:[#allocation12 + $0x10] sm:$0xff]  }
 0x1f8   :  { %v2002_v51 = vpop.f32.mrf.mxu0 }
 0x1fa   :  { %v2003_v10 = vpop.f32.mrf.mxu0 }
 0x203   :  { %v2039_v60 = vpop.f32.mrf.mxu1 }
 0x204   :  { %v2040_v35 = vadd.f32 %v2039_v60, %v1999_v54 }
 0x205   :  { %v2041_v11 = vpop.f32.mrf.mxu1 }
 0x206   :  { %v2042_v17 = vadd.f32 %v2041_v11, %v2001_v2  ;;  %v2048_v22 = vmax.f32 %v2040_v35, 0.0  ;;  %v3116_v2 = vld [vmem:[%s4124_s8] ss:$0 sm:$0xff] }
 0x207   :  { %v2043_v19 = vpop.f32.mrf.mxu1 }
 0x208   :  { %v2049_v20 = vmax.f32 %v2042_v17, 0.0  ;;  %v2052_v49 = vpack.c.bf16 %v2048_v22, %v2048_v22 }
 0x209   :  { %v2044_v55 = vpop.f32.mrf.mxu1 }
 0x20a   :  { %v2053_v32 = vpack.c.bf16 %v2049_v20, %v2049_v20 }
 0x20c   :  { %2523 = vmatprep.mubr.bf16.mxu1 %v2053_v32 }
 0x20d   :  { %2524 = vmatmul.mubr.bf16.vlgmr.msra.gmra.mxu1 %v2052_v49 }
 0x20e   :  { %3157 = vmatpush3.bf16.msra.mxu1 %v3593_v44  ;;  %3172 = vmatprep.mubr.msk.bf16.mxu1 %vm3766_vm7, %v3765_v42 }
 0x20f   :  { %3158 = vmatprep.subr.bf16.mxu1 %v3765_v42 }
 0x212   :  { %3159 = vmatpush3.bf16.msra.mxu1 %v3594_v15 }
 0x213   :  { %3160 = vmatprep.subr.bf16.mxu1 %v3765_v42 }
 0x216   :  { %3161 = vmatpush3.bf16.msra.mxu1 %v3595_v61 }
 0x217   :  { %3162 = vmatprep.subr.bf16.mxu1 %v3765_v42 }
 0x21a   :  { %3163 = vmatpush3.bf16.msra.mxu1 %v3596_v3 }
 0x21b   :  { %3164 = vmatprep.subr.bf16.mxu1 %v3765_v42 }
 0x21e   :  { %3165 = vmatpush3.bf16.msra.mxu1 %v3597_v53 }
 0x21f   :  { %3166 = vmatprep.subr.bf16.mxu1 %v3765_v42 }
 0x222   :  { %3167 = vmatpush3.bf16.msra.mxu1 %v3598_v39 }
 0x223   :  { %3168 = vmatprep.subr.bf16.mxu1 %v3765_v42 }
 0x226   :  { %3169 = vmatpush3.bf16.msra.mxu1 %v3599_v43 }
 0x227   :  { %3170 = vmatprep.subr.bf16.mxu1 %v3765_v42 }
 0x22a   :  { %3171 = vmatpush3.bf16.msra.mxu1 %v3600_v7 }
 0x27e   :  { %v2484_v58 = vpop.f32.mrf.mxu0 }
 0x27f   :  { %v2485_v34 = vadd.f32 %v2484_v58, %v2123_v56 }
 0x280   :  { %v2486_v62 = vpop.f32.mrf.mxu0 }
 0x281   :  { %v2487_v38 = vadd.f32 %v2486_v62, %v2127_v48 }
 0x282   :  { %v2488_v31 = vpop.f32.mrf.mxu0 }
 0x284   :  { %v2489_v37 = vpop.f32.mrf.mxu0 }
 0x2cd   :  { %v2525_v59 = vpop.f32.mrf.mxu1 }
 0x2ce   :  { %v2526_v12 = vadd.f32 %v2525_v59, %v2485_v34 }
 0x2cf   :  { %v2527_v57 = vpop.f32.mrf.mxu1 }
 0x2d0   :  { %v2528_v40 = vadd.f32 %v2527_v57, %v2487_v38  ;;  %v2532_v36 = vmax.f32 %v2526_v12, 0.0 }
 0x2d1   :  { %v2529_v46 = vpop.f32.mrf.mxu1 }
 0x2d2   :  { %v2533_v52 = vmax.f32 %v2528_v40, 0.0  ;;  %v2534_v8 = vpack.c.bf16 %v2532_v36, %v2532_v36 }
 0x2d3   :  { %v2530_v18 = vpop.f32.mrf.mxu1 }
 0x2d4   :  { %v2535_v63 = vpack.c.bf16 %v2533_v52, %v2533_v52 }
 0x2d6   :  { %2703 = vmatprep.mubr.bf16.mxu0 %v2535_v63 }
 0x2d7   :  { %2704 = vmatmul.mubr.bf16.vlgmr.msra.gmra.mxu0 %v2534_v8 }
 0x397   :  { %v3141_v33 = vpop.f32.mrf.mxu0 }
 0x399   :  { %v3142_v51 = vpop.f32.mrf.mxu0 }
 0x39a   :  { %v3143_v0 = vadd.f32 %v3142_v51, %v3141_v33 }
 0x39b   :  { %v3144_v10 = vpop.f32.mrf.mxu0 }
 0x39c   :  { %v2706_v9 = vadd.f32 %v3143_v0, %v3099_v50 }
 0x39d   :  { %v3145_v45 = vpop.f32.mrf.mxu0 }
 0x39e   :  { %v2711_v47 = vmax.f32 %v2706_v9, 0.0 }
 0x3a0   :  { %v2712_v54 = vpack.c.bf16 %v2711_v47, %v2711_v47 }
 0x3a2   :  { %3173 = vmatmul.mubr.bf16.vlgmr.msra.gmra.mxu1 %v2712_v54 }
 0x462   :  { %v2818_v60 = vpop.f32.mrf.mxu1 }
 0x463   :  { %v2819_v35 = vadd.f32 %v3116_v2, %v2818_v60 }
 0x464   :  { %v3174_v11 = vpop.f32.mrf.mxu1 }
 0x465   :  { %2824 = vst [vmem:[#allocation14] sm:$0xff] %v2819_v35 }
 0x466   :  { %v2821_v14 = vpop.f32.mrf.mxu1 }
 0x467   :  { %3732 = shalt.err (!%p3729_p6)
}
 0x468   :  { %2834 = dma.vmem_to_hbm [thread:$0]  %s2832_s25, 128, %s4125_s9, [#allocation5]   ;;  %v3175_v26 = vpop.f32.mrf.mxu1 }
 0x469   :  { %3749 = dma.done.wait [#allocation5], 128  }
 0x46a   :  { %3750 = vsyncadd [#allocation5], 4294967168 }
 0x46b   :  { %2838 = vsyncpa [#allocation4], 1 }
 0x46c   :  { %2839 = vsyncpa [#allocation7], 1 }
 0x46d   :  { %2840 = vsyncpa [#allocation10], 1 }
 0x46e   :  { %2841 = vsyncpa [#allocation13], 1 }
 0x46f   :  { %2842 = vsyncpa [#allocation5], 1 }

</bundles_post_ra>
